<compile_context>
chip_gen: v6e
topology: v6e:2x2x1
jax: 0.10.0
libtpu: 0.0.40
codegen_flags: <defaults>
</compile_context>

<pallas_src>
import functools
import math

import jax
import jax.numpy as jnp
from jax.experimental import pallas as pl
from jax.experimental.pallas import tpu as pltpu


# --------------------------- hardware-derived knobs ---------------------------

@functools.lru_cache(maxsize=None)
def _vmem_limit_bytes():
    """Per-generation scoped-VMEM cap (~80% of physical, leaves compiler headroom).

    ~102 MiB on v5e/v6e (128 MiB physical), ~51 MiB on v7x (64 MiB physical).
    """
    try:
        cap = int(pltpu.get_tpu_info().vmem_capacity_bytes)
    except Exception:                      # info unavailable -> assume v5e/v6e class
        cap = 128 * 1024 * 1024
    return (cap * 4) // 5


def _pick_batch_block(B, cap):
    """Largest divisor of B that is <= cap and sublane-aligned (multiple of 8).

    Falls back to the full batch (block == full array dim is always layout-legal)
    rather than emitting a non-multiple-of-8 partial block.
    """
    cap = max(1, min(B, cap))
    for nb in range(cap, 0, -1):
        if B % nb == 0 and nb % 8 == 0:
            return nb
    return B


def _be_batch_block(B, S, V, vmem_limit):
    # Per-example (NB, V, V) bf16 U block (x2 pipeline buffers) dominates;
    # activations are (NB, S, V) f32 (in + out + headroom for temporaries).
    per_row = 2 * (2 * V * V) + 3 * 2 * (4 * S * V) + 2 * 4 * V
    budget = ((vmem_limit * 3) // 4) // per_row
    # TODO(synk): at production V (>= 2k), add a K-reduction grid axis over the U
    # contraction ("arbitrary", f32 VMEM accumulator, pl.when init/finalize) and/or
    # compress U to int8 (v5e/v6e) / fp8 (v7x) instead of relying on a small NB
    # alone — required to stay under v7x's 64 MiB VMEM and to cut the HBM-bound
    # (B,V,V) weight stream.
    return _pick_batch_block(B, max(1, budget))


def _ll_batch_block(B, H, F, VSp, vmem_limit):
    # LL weights are batch-invariant, so NB is the MXU M dim: target 256 rows
    # (review: >=128), but keep >=2 grid steps once B is large enough so both v7x
    # TensorCores stay busy on the "parallel" batch axis.
    weight_bytes = 2 * 2 * (3 * H * F + H * VSp)             # bf16 weights x2 buffers
    per_row = 8 * (2 * H + max(H, VSp)) + 4 * (3 * H + 4 * F + VSp)
    budget = ((vmem_limit * 3) // 4 - weight_bytes) // per_row
    target = 256 if B < 16 else min(256, max(8, B // 2))
    return _pick_batch_block(B, min(target, max(1, budget)))


# ----------------------------- in-kernel helpers -----------------------------

def _layernorm(x, gamma=None, beta=None, eps=1e-5):
    # Two-pass mean/var (matches torch.nn.LayerNorm numerics; single-pass
    # E[x^2]-E[x]^2 cancels badly here because sigmoid(emb) ~ 0.5 +- 1e-2).
    mu = jnp.mean(x, axis=-1, keepdims=True)
    xc = x - mu
    var = jnp.mean(xc * xc, axis=-1, keepdims=True)
    y = xc * jax.lax.rsqrt(var + eps)
    if gamma is not None:
        y = y * gamma + beta
    return y


def _gelu(x):
    # TODO(synk): PyTorch F.gelu default is the exact erf GELU; tanh approximation
    # used here (erf lowering not guaranteed in Mosaic).  Kept in f32 — v5e has no
    # bf16 VPU/EUP; on v6e/v7x a bf16 tanh path would ~2x EUP throughput.
    c = math.sqrt(2.0 / math.pi)
    return 0.5 * x * (1.0 + jnp.tanh(c * (x + 0.044715 * x * x * x)))


# ------------------------------- BELayer kernel -------------------------------
# Per batch block (NB examples):
#   xn  = LayerNorm1(x)                         (NB, S, V)   [affine only if layer 0]
#   act = einsum('nsv,nvw->nsw', xn, U) + bias  (per-example dense, MXU bf16)
#   out = (xn + gelu(LayerNorm2(act))) / 2

def _be_kernel(*refs, affine1):
    if affine1:
        x_ref, u_ref, b_ref, g1_ref, b1_ref, g2_ref, b2_ref, o_ref = refs
        g1, b1 = g1_ref[...], b1_ref[...]
    else:
        x_ref, u_ref, b_ref, g2_ref, b2_ref, o_ref = refs
        g1 = b1 = None
    x = x_ref[...]                                            # (NB, S, V) f32
    xn = _layernorm(x, g1, b1)                                # LN over V
    act = jnp.einsum('nsv,nvw->nsw',
                     xn.astype(jnp.bfloat16), u_ref[...],
                     preferred_element_type=jnp.float32) + b_ref[...]
    yn = _layernorm(act, g2_ref[...], b2_ref[...])
    o_ref[...] = (xn + _gelu(yn)) * 0.5


def be_layer(x3, p, *, affine1):
    B, S, V = x3.shape
    vmem_limit = _vmem_limit_bytes()
    NB = _be_batch_block(B, S, V, vmem_limit)
    row3 = lambda n: (n, 0, 0)
    rep3 = lambda n: (0, 0, 0)
    in_specs = [
        pl.BlockSpec((NB, S, V), row3),          # x   (lane-dense once V >= 128)
        pl.BlockSpec((NB, V, V), row3),          # per-example U weight (bf16)
        pl.BlockSpec((NB, 1, V), row3),          # per-example bias
    ]
    args = [x3, p["U"], p["bias"]]
    if affine1:
        in_specs += [pl.BlockSpec((1, 1, V), rep3), pl.BlockSpec((1, 1, V), rep3)]
        args += [p["g1"], p["b1"]]
    in_specs += [pl.BlockSpec((1, 1, V), rep3), pl.BlockSpec((1, 1, V), rep3)]
    args += [p["g2"], p["b2"]]
    # TODO(synk): at production shapes mark the replicated gamma/beta blocks with
    # pipeline_mode=pl.Buffered(1) to drop their redundant double buffer.
    cost = pl.CostEstimate(
        flops=int(2 * B * S * V * V + 15 * B * S * V),
        transcendentals=int(B * S * V),
        bytes_accessed=int(8 * B * S * V + 2 * B * V * V + 4 * B * V + 16 * V))
    return pl.pallas_call(
        functools.partial(_be_kernel, affine1=affine1),
        out_shape=jax.ShapeDtypeStruct((B, S, V), jnp.float32),
        grid=(B // NB,),
        in_specs=in_specs,
        out_specs=pl.BlockSpec((NB, S, V), row3),
        compiler_params=pltpu.CompilerParams(
            dimension_semantics=("parallel",),
            vmem_limit_bytes=vmem_limit),
        cost_estimate=cost,
    )(*args)


# -------------------- LinearLayer + SGU + gated-mix kernel --------------------
# hn = LN1(h); u = gelu(hn@Wu+bu); v = gelu(hn@Wv+bv); v = LN(v)*w + b
# y  = (u*v)@Vw + Vb; out_ll = (hn + gelu(LN2(y)))/2
# mixed = out_ll * sigmoid(W1) + x * (1 - sigmoid(W1))    (x == last_x)
# last layer only: logits = mixed @ lin_w + lin_b  (vocab padded to 128 lanes)

def _ll_core(h, x, g1, b1, uwu, ubu, uwv, ubv, sgg, sgb, vw, vb, g2, b2,
             sp_w, sp_b, s):
    hn = _layernorm(h, g1, b1)                               # (NB, H) f32
    hnb = hn.astype(jnp.bfloat16)
    u = _gelu(jnp.dot(hnb, uwu, preferred_element_type=jnp.float32) + ubu)
    v = _gelu(jnp.dot(hnb, uwv, preferred_element_type=jnp.float32) + ubv)
    v = _layernorm(v, sgg, sgb) * sp_w + sp_b                # Conv1d(1,1,1) == scalar affine
    g = (u * v).astype(jnp.bfloat16)
    y = jnp.dot(g, vw, preferred_element_type=jnp.float32) + vb
    out_ll = (hn + _gelu(_layernorm(y, g2, b2))) * 0.5
    return out_ll * s + x * (1.0 - s)                        # sigmoid(W1) gated residual


def _ll_kernel(*refs, has_proj):
    if has_proj:
        (h_ref, x_ref, g1_ref, b1_ref, uwu_ref, ubu_ref, uwv_ref, ubv_ref,
         sgg_ref, sgb_ref, vw_ref, vb_ref, g2_ref, b2_ref, scal_ref,
         lw_ref, lb_ref, o_ref) = refs
    else:
        (h_ref, x_ref, g1_ref, b1_ref, uwu_ref, ubu_ref, uwv_ref, ubv_ref,
         sgg_ref, sgb_ref, vw_ref, vb_ref, g2_ref, b2_ref, scal_ref,
         o_ref) = refs
    mixed = _ll_core(
        h_ref[...], x_ref[...], g1_ref[...], b1_ref[...], uwu_ref[...],
        ubu_ref[...], uwv_ref[...], ubv_ref[...], sgg_ref[...], sgb_ref[...],
        vw_ref[...], vb_ref[...], g2_ref[...], b2_ref[...],
        scal_ref[0], scal_ref[1], scal_ref[2])
    if has_proj:
        # fused final vocab projection — lane-dense (padded-to-128) unmasked stores
        o_ref[...] = jnp.dot(mixed.astype(jnp.bfloat16), lw_ref[...],
                             preferred_element_type=jnp.float32) + lb_ref[...]
    else:
        o_ref[...] = mixed


def linear_mix_layer(h, x, p, scal, proj=None):
    B, H = h.shape
    F = p["ub_u"].shape[1]
    VSp = proj[0].shape[1] if proj is not None else 0
    vmem_limit = _vmem_limit_bytes()
    NB = _ll_batch_block(B, H, F, VSp, vmem_limit)
    row = lambda n: (n, 0)
    rep = lambda n: (0, 0)
    in_specs = [
        pl.BlockSpec((NB, H), row),                          # h  (BE output)
        pl.BlockSpec((NB, H), row),                          # x  (layer input == last_x)
        pl.BlockSpec((1, H), rep), pl.BlockSpec((1, H), rep),    # ln1 gamma / beta
        pl.BlockSpec((H, F), rep), pl.BlockSpec((1, F), rep),    # U_map u half (bf16)
        pl.BlockSpec((H, F), rep), pl.BlockSpec((1, F), rep),    # U_map v half (bf16)
        pl.BlockSpec((1, F), rep), pl.BlockSpec((1, F), rep),    # SGU norm gamma / beta
        pl.BlockSpec((F, H), rep), pl.BlockSpec((1, H), rep),    # V_map weight (bf16) / bias
        pl.BlockSpec((1, H), rep), pl.BlockSpec((1, H), rep),    # ln2 gamma / beta
        pl.BlockSpec(memory_space=pltpu.MemorySpace.SMEM),       # [sp_w, sp_b, sigmoid(W1)]
    ]
    args = [h, x, p["g1"], p["b1"], p["uw_u"], p["ub_u"], p["uw_v"], p["ub_v"],
            p["sg"], p["sb"], p["vw"], p["vb"], p["g2"], p["b2"], scal]
    # TODO(synk): at production H/F the (H,F)/(F,H) weights need a K-reduction grid
    # axis ("arbitrary") with an f32 VMEM accumulator, the fused vocab projection an
    # output-N grid axis over VSp, and the constant blocks pipeline_mode=
    # pl.Buffered(1); single replicated weight blocks only fit at these model sizes.
    flops = 4 * B * H * F + 2 * B * F * H + 40 * B * H
    bytes_acc = 12 * B * H + 2 * 3 * H * F + 16 * H + 16 * F
    if proj is None:
        out_shape = jax.ShapeDtypeStruct((B, H), jnp.float32)
        out_spec = pl.BlockSpec((NB, H), row)
    else:
        lw, lb = proj
        in_specs += [pl.BlockSpec((H, VSp), rep), pl.BlockSpec((1, VSp), rep)]
        args += [lw, lb]
        out_shape = jax.ShapeDtypeStruct((B, VSp), jnp.float32)
        out_spec = pl.BlockSpec((NB, VSp), row)
        flops += 2 * B * H * VSp
        bytes_acc += 2 * H * VSp + 4 * B * VSp
    cost = pl.CostEstimate(flops=int(flops),
                           transcendentals=int(B * (2 * F + H)),
                           bytes_accessed=int(bytes_acc))
    return pl.pallas_call(
        functools.partial(_ll_kernel, has_proj=proj is not None),
        out_shape=out_shape,
        grid=(B // NB,),
        in_specs=in_specs,
        out_specs=out_spec,
        compiler_params=pltpu.CompilerParams(
            dimension_semantics=("parallel",),
            vmem_limit_bytes=vmem_limit),
        cost_estimate=cost,
    )(*args)


# ------------------------------ parameter setup ------------------------------

def init_params(key, cfg):
    B, L = cfg["batchsize"], cfg["layers"]
    T, Vd = cfg["timesteps"], cfg["vocab_dim"]
    F, VS = cfg["ffn_dim"], cfg["vocab_size"]
    H = T * Vd
    VSp = ((VS + 127) // 128) * 128          # lane-dense final projection width
    keys = iter(jax.random.split(key, 32 * (L + 2)))

    def nrm(shape, std=0.01, dtype=jnp.float32):
        return (std * jax.random.normal(next(keys), shape, jnp.float32)).astype(dtype)

    lin_w = jnp.zeros((H, VSp), jnp.float32).at[:, :VS].set(nrm((H, VS)))
    lin_b = jnp.zeros((1, VSp), jnp.float32).at[:, :VS].set(nrm((1, VS)))
    params = {
        "embedding": nrm((VS, Vd)),
        # torch lin.weight is (VS, H); stored transposed + lane-padded as bf16 MXU operand.
        "lin_w": lin_w.astype(jnp.bfloat16),
        "lin_b": lin_b,
        # TODO(synk): torch W1 is float64; float32 used here (sigmoid(0) == 0.5 either way).
        "W1": jnp.zeros((L,), jnp.float32),
        "be": [],
        "ll": [],
    }
    sp_rows = []
    for j in range(L):
        V = Vd * (2 ** j)
        # TODO(synk): at production V, store U as int8 (v5e/v6e) / fp8 (v7x) with a
        # per-example scale to halve the HBM-bound (B,V,V) weight stream.
        be = dict(
            U=nrm((B, V, V), dtype=jnp.bfloat16),
            bias=nrm((B, 1, V)),
            g2=jnp.ones((1, 1, V), jnp.float32), b2=jnp.zeros((1, 1, V), jnp.float32),
        )
        if j == 0:
            # Only layer 0's BE LayerNorm1 is affine in torch; later layers carry
            # no LN1 params at all (no identity mul/add, no gamma/beta DMA).
            be["g1"] = jnp.ones((1, 1, V), jnp.float32)
            be["b1"] = jnp.zeros((1, 1, V), jnp.float32)
        params["be"].append(be)
        # Conv1d(1,1,1) degenerates to scalar affine: [weight(uniform), bias(=1.0)].
        sp_w = jax.random.uniform(next(keys), (), jnp.float32, -1.0, 1.0)
        sp_rows.append(jnp.stack([sp_w, jnp.array(1.0, jnp.float32)]))
        params["ll"].append(dict(
            g1=jnp.ones((1, H), jnp.float32), b1=jnp.zeros((1, H), jnp.float32),
            # torch U_map.weight is (2F, H); stored transposed and split into two
            # lane-aligned (H, F) halves so the SGU chunk never cuts inside a vreg.
            uw_u=nrm((H, F), dtype=jnp.bfloat16), ub_u=nrm((1, F)),
            uw_v=nrm((H, F), dtype=jnp.bfloat16), ub_v=nrm((1, F)),
            sg=jnp.ones((1, F), jnp.float32), sb=jnp.zeros((1, F), jnp.float32),
            vw=nrm((F, H), dtype=jnp.bfloat16), vb=nrm((1, H)),
            g2=jnp.ones((1, H), jnp.float32), b2=jnp.zeros((1, H), jnp.float32),
        ))
    params["sp"] = jnp.stack(sp_rows)          # (L, 2): [spatial_proj weight, bias]
    return params


# --------------------------------- forward -----------------------------------

def mixed_model_forward(tokens, params, cfg):
    B = tokens.shape[0]
    T, Vd, L = cfg["timesteps"], cfg["vocab_dim"], cfg["layers"]
    VS = cfg["vocab_size"]
    H = T * Vd
    assert L >= 1

    emb = params["embedding"][tokens]               # (B, T, Vd) gather (XLA glue)
    x = jax.nn.sigmoid(emb).reshape(B, H)           # f32 activations

    # All per-layer scalars computed once: [sp_w, sp_b, sigmoid(W1[j])] -> (L, 3)
    scal_all = jnp.concatenate(
        [params["sp"], jax.nn.sigmoid(params["W1"])[:, None]], axis=1
    ).astype(jnp.float32)

    logits = None
    for j in range(L):
        V = Vd * (2 ** j)
        S = T // (2 ** j)
        bp, lp = params["be"][j], params["ll"][j]
        # fused BELayer on the (B, S, V) chunk view (init_token_order == row-major
        # reshape; free bitcast at the XLA level)
        h = be_layer(x.reshape(B, S, V), bp, affine1=(j == 0)).reshape(B, H)
        # fused LinearLayer + SGU + sigmoid(W1) gated residual (last_x == x here);
        # the last layer additionally fuses the lane-dense final vocab projection.
        if j == L - 1:
            logits = linear_mix_layer(h, x, lp, scal_all[j],
                                      proj=(params["lin_w"], params["lin_b"]))
        else:
            x = linear_mix_layer(h, x, lp, scal_all[j])

    return logits[:, :VS].reshape(B, 1, VS)


# ----------------------------------- main -------------------------------------

if __name__ == "__main__":
    cfg = dict(batchsize=2, layers=2, hidden_dim=64, ffn_dim=32,
               vocab_dim=8, timesteps=8, vocab_size=16)
    assert cfg["hidden_dim"] == cfg["timesteps"] * cfg["vocab_dim"]

    key = jax.random.PRNGKey(0)
    pkey, tkey = jax.random.split(key)
    params = init_params(pkey, cfg)
    tokens = jax.random.randint(
        tkey, (cfg["batchsize"], cfg["timesteps"]), 0, cfg["vocab_size"],
        dtype=jnp.int32)

    fwd = jax.jit(functools.partial(mixed_model_forward, cfg=cfg))
    out = jax.block_until_ready(fwd(tokens, params))
    assert out.shape == (cfg["batchsize"], 1, cfg["vocab_size"])
    assert bool(jnp.all(jnp.isfinite(out)))
    print("KERNEL_OK")
</pallas_src>

<mosaic_0001>
module attributes {stable_mosaic.version = 11 : i64} {
  func.func @_be_kernel(%arg0: i32, %arg1: memref<2x8x8xf32, #tpu.memory_space<vmem>>, %arg2: memref<2x8x8xbf16, #tpu.memory_space<vmem>>, %arg3: memref<2x1x8xf32, #tpu.memory_space<vmem>>, %arg4: memref<1x1x8xf32, #tpu.memory_space<vmem>>, %arg5: memref<1x1x8xf32, #tpu.memory_space<vmem>>, %arg6: memref<1x1x8xf32, #tpu.memory_space<vmem>>, %arg7: memref<1x1x8xf32, #tpu.memory_space<vmem>>, %arg8: memref<2x8x8xf32, #tpu.memory_space<vmem>>) attributes {dimension_semantics = [#tpu.dimension_semantics<parallel>], iteration_bounds = array<i64: 1>, scalar_prefetch = 0 : i64, scratch_operands = 0 : i64, tpu.core_type = #tpu.core_type<tc>, window_params = [{transform_indices = @transform_0, window_bounds = array<i64: 2, 8, 8>}, {transform_indices = @transform_1, window_bounds = array<i64: 2, 8, 8>}, {transform_indices = @transform_2, window_bounds = array<i64: 2, 1, 8>}, {pipeline_mode = #tpu.pipeline_mode<synchronous>, transform_indices = @transform_3, window_bounds = array<i64: 1, 1, 8>}, {pipeline_mode = #tpu.pipeline_mode<synchronous>, transform_indices = @transform_4, window_bounds = array<i64: 1, 1, 8>}, {pipeline_mode = #tpu.pipeline_mode<synchronous>, transform_indices = @transform_5, window_bounds = array<i64: 1, 1, 8>}, {pipeline_mode = #tpu.pipeline_mode<synchronous>, transform_indices = @transform_6, window_bounds = array<i64: 1, 1, 8>}, {transform_indices = @transform_7, window_bounds = array<i64: 2, 8, 8>}]} {
    %c0 = arith.constant 0 : index
    %c0_0 = arith.constant 0 : index
    %c0_1 = arith.constant 0 : index
    %0 = vector.load %arg4[%c0, %c0_0, %c0_1] : memref<1x1x8xf32, #tpu.memory_space<vmem>>, vector<1x1x8xf32>
    %c0_2 = arith.constant 0 : index
    %c0_3 = arith.constant 0 : index
    %c0_4 = arith.constant 0 : index
    %1 = vector.load %arg5[%c0_2, %c0_3, %c0_4] : memref<1x1x8xf32, #tpu.memory_space<vmem>>, vector<1x1x8xf32>
    %c0_5 = arith.constant 0 : index
    %c0_6 = arith.constant 0 : index
    %c0_7 = arith.constant 0 : index
    %2 = vector.load %arg1[%c0_5, %c0_6, %c0_7] : memref<2x8x8xf32, #tpu.memory_space<vmem>>, vector<2x8x8xf32>
    %cst = arith.constant dense<0.000000e+00> : vector<2x8xf32>
    %3 = vector.multi_reduction <add>, %2, %cst [2] : vector<2x8x8xf32> to vector<2x8xf32>
    %4 = vector.shape_cast %3 : vector<2x8xf32> to vector<2x8x1xf32>
    %cst_8 = arith.constant 8.000000e+00 : f32
    %5 = vector.broadcast %cst_8 : f32 to vector<2x8x1xf32>
    %6 = arith.divf %4, %5 : vector<2x8x1xf32>
    %7 = vector.broadcast %6 : vector<2x8x1xf32> to vector<2x8x8xf32>
    %8 = arith.subf %2, %7 : vector<2x8x8xf32>
    %9 = arith.mulf %8, %8 : vector<2x8x8xf32>
    %cst_9 = arith.constant dense<0.000000e+00> : vector<2x8xf32>
    %10 = vector.multi_reduction <add>, %9, %cst_9 [2] : vector<2x8x8xf32> to vector<2x8xf32>
    %11 = vector.shape_cast %10 : vector<2x8xf32> to vector<2x8x1xf32>
    %cst_10 = arith.constant 8.000000e+00 : f32
    %12 = vector.broadcast %cst_10 : f32 to vector<2x8x1xf32>
    %13 = arith.divf %11, %12 : vector<2x8x1xf32>
    %cst_11 = arith.constant 9.99999974E-6 : f32
    %14 = vector.broadcast %cst_11 : f32 to vector<2x8x1xf32>
    %15 = arith.addf %13, %14 : vector<2x8x1xf32>
    %16 = math.rsqrt %15 : vector<2x8x1xf32>
    %17 = vector.broadcast %16 : vector<2x8x1xf32> to vector<2x8x8xf32>
    %18 = arith.mulf %8, %17 : vector<2x8x8xf32>
    %19 = vector.broadcast %0 : vector<1x1x8xf32> to vector<2x8x8xf32>
    %20 = arith.mulf %18, %19 : vector<2x8x8xf32>
    %21 = vector.broadcast %1 : vector<1x1x8xf32> to vector<2x8x8xf32>
    %22 = arith.addf %20, %21 : vector<2x8x8xf32>
    %23 = arith.truncf %22 : vector<2x8x8xf32> to vector<2x8x8xbf16>
    %c0_12 = arith.constant 0 : index
    %c0_13 = arith.constant 0 : index
    %c0_14 = arith.constant 0 : index
    %24 = vector.load %arg2[%c0_12, %c0_13, %c0_14] : memref<2x8x8xbf16, #tpu.memory_space<vmem>>, vector<2x8x8xbf16>
    "tpu.trace_start"() <{level = 10 : i32, message = "nsv,nvw->nsw"}> : () -> ()
    %cst_15 = arith.constant dense<0.000000e+00> : vector<2x8x8xf32>
    %25 = tpu.matmul %23, %24, %cst_15 {dimension_numbers = #tpu.dot_dimension_numbers<[2], [1], [1], [2], [0, 0, 0, 1, 1, 2], [0], [0]>} : vector<2x8x8xbf16>, vector<2x8x8xbf16>, vector<2x8x8xf32> -> vector<2x8x8xf32>
    "tpu.trace_stop"() : () -> ()
    %c0_16 = arith.constant 0 : index
    %c0_17 = arith.constant 0 : index
    %c0_18 = arith.constant 0 : index
    %26 = vector.load %arg3[%c0_16, %c0_17, %c0_18] : memref<2x1x8xf32, #tpu.memory_space<vmem>>, vector<2x1x8xf32>
    %27 = vector.broadcast %26 : vector<2x1x8xf32> to vector<2x8x8xf32>
    %28 = arith.addf %25, %27 : vector<2x8x8xf32>
    %c0_19 = arith.constant 0 : index
    %c0_20 = arith.constant 0 : index
    %c0_21 = arith.constant 0 : index
    %29 = vector.load %arg6[%c0_19, %c0_20, %c0_21] : memref<1x1x8xf32, #tpu.memory_space<vmem>>, vector<1x1x8xf32>
    %c0_22 = arith.constant 0 : index
    %c0_23 = arith.constant 0 : index
    %c0_24 = arith.constant 0 : index
    %30 = vector.load %arg7[%c0_22, %c0_23, %c0_24] : memref<1x1x8xf32, #tpu.memory_space<vmem>>, vector<1x1x8xf32>
    %cst_25 = arith.constant dense<0.000000e+00> : vector<2x8xf32>
    %31 = vector.multi_reduction <add>, %28, %cst_25 [2] : vector<2x8x8xf32> to vector<2x8xf32>
    %32 = vector.shape_cast %31 : vector<2x8xf32> to vector<2x8x1xf32>
    %cst_26 = arith.constant 8.000000e+00 : f32
    %33 = vector.broadcast %cst_26 : f32 to vector<2x8x1xf32>
    %34 = arith.divf %32, %33 : vector<2x8x1xf32>
    %35 = vector.broadcast %34 : vector<2x8x1xf32> to vector<2x8x8xf32>
    %36 = arith.subf %28, %35 : vector<2x8x8xf32>
    %37 = arith.mulf %36, %36 : vector<2x8x8xf32>
    %cst_27 = arith.constant dense<0.000000e+00> : vector<2x8xf32>
    %38 = vector.multi_reduction <add>, %37, %cst_27 [2] : vector<2x8x8xf32> to vector<2x8xf32>
    %39 = vector.shape_cast %38 : vector<2x8xf32> to vector<2x8x1xf32>
    %cst_28 = arith.constant 8.000000e+00 : f32
    %40 = vector.broadcast %cst_28 : f32 to vector<2x8x1xf32>
    %41 = arith.divf %39, %40 : vector<2x8x1xf32>
    %cst_29 = arith.constant 9.99999974E-6 : f32
    %42 = vector.broadcast %cst_29 : f32 to vector<2x8x1xf32>
    %43 = arith.addf %41, %42 : vector<2x8x1xf32>
    %44 = math.rsqrt %43 : vector<2x8x1xf32>
    %45 = vector.broadcast %44 : vector<2x8x1xf32> to vector<2x8x8xf32>
    %46 = arith.mulf %36, %45 : vector<2x8x8xf32>
    %47 = vector.broadcast %29 : vector<1x1x8xf32> to vector<2x8x8xf32>
    %48 = arith.mulf %46, %47 : vector<2x8x8xf32>
    %49 = vector.broadcast %30 : vector<1x1x8xf32> to vector<2x8x8xf32>
    %50 = arith.addf %48, %49 : vector<2x8x8xf32>
    %cst_30 = arith.constant 5.000000e-01 : f32
    %51 = vector.broadcast %cst_30 : f32 to vector<2x8x8xf32>
    %52 = arith.mulf %51, %50 : vector<2x8x8xf32>
    %cst_31 = arith.constant 4.471500e-02 : f32
    %53 = vector.broadcast %cst_31 : f32 to vector<2x8x8xf32>
    %54 = arith.mulf %53, %50 : vector<2x8x8xf32>
    %55 = arith.mulf %54, %50 : vector<2x8x8xf32>
    %56 = arith.mulf %55, %50 : vector<2x8x8xf32>
    %57 = arith.addf %50, %56 : vector<2x8x8xf32>
    %cst_32 = arith.constant 0.797884583 : f32
    %58 = vector.broadcast %cst_32 : f32 to vector<2x8x8xf32>
    %59 = arith.mulf %58, %57 : vector<2x8x8xf32>
    %60 = math.tanh %59 : vector<2x8x8xf32>
    %cst_33 = arith.constant 1.000000e+00 : f32
    %61 = vector.broadcast %cst_33 : f32 to vector<2x8x8xf32>
    %62 = arith.addf %61, %60 : vector<2x8x8xf32>
    %63 = arith.mulf %52, %62 : vector<2x8x8xf32>
    %64 = arith.addf %22, %63 : vector<2x8x8xf32>
    %cst_34 = arith.constant 5.000000e-01 : f32
    %65 = vector.broadcast %cst_34 : f32 to vector<2x8x8xf32>
    %66 = arith.mulf %64, %65 : vector<2x8x8xf32>
    %c0_35 = arith.constant 0 : index
    %c0_36 = arith.constant 0 : index
    %c0_37 = arith.constant 0 : index
    %67 = vector.load %arg8[%c0_35, %c0_36, %c0_37] : memref<2x8x8xf32, #tpu.memory_space<vmem>>, vector<2x8x8xf32>
    tpu.vector_store %arg8[%c0_35, %c0_36, %c0_37], %66 {strides = array<i32>} : memref<2x8x8xf32, #tpu.memory_space<vmem>>, vector<2x8x8xf32>,
    return
  }
  func.func @transform_0(%arg0: i32) -> (i32, i32, i32) {
    %c0_i32 = arith.constant 0 : i32
    %c0_i32_0 = arith.constant 0 : i32
    %c0_i32_1 = arith.constant 0 : i32
    return %arg0, %c0_i32, %c0_i32_0 : i32, i32, i32
  }
  func.func @transform_1(%arg0: i32) -> (i32, i32, i32) {
    %c0_i32 = arith.constant 0 : i32
    %c0_i32_0 = arith.constant 0 : i32
    %c0_i32_1 = arith.constant 0 : i32
    return %arg0, %c0_i32, %c0_i32_0 : i32, i32, i32
  }
  func.func @transform_2(%arg0: i32) -> (i32, i32, i32) {
    %c0_i32 = arith.constant 0 : i32
    %c0_i32_0 = arith.constant 0 : i32
    %c0_i32_1 = arith.constant 0 : i32
    return %arg0, %c0_i32, %c0_i32_0 : i32, i32, i32
  }
  func.func @transform_3(%arg0: i32) -> (i32, i32, i32) {
    %c0_i32 = arith.constant 0 : i32
    %c0_i32_0 = arith.constant 0 : i32
    %c0_i32_1 = arith.constant 0 : i32
    %c0_i32_2 = arith.constant 0 : i32
    return %c0_i32, %c0_i32_0, %c0_i32_1 : i32, i32, i32
  }
  func.func @transform_4(%arg0: i32) -> (i32, i32, i32) {
    %c0_i32 = arith.constant 0 : i32
    %c0_i32_0 = arith.constant 0 : i32
    %c0_i32_1 = arith.constant 0 : i32
    %c0_i32_2 = arith.constant 0 : i32
    return %c0_i32, %c0_i32_0, %c0_i32_1 : i32, i32, i32
  }
  func.func @transform_5(%arg0: i32) -> (i32, i32, i32) {
    %c0_i32 = arith.constant 0 : i32
    %c0_i32_0 = arith.constant 0 : i32
    %c0_i32_1 = arith.constant 0 : i32
    %c0_i32_2 = arith.constant 0 : i32
    return %c0_i32, %c0_i32_0, %c0_i32_1 : i32, i32, i32
  }
  func.func @transform_6(%arg0: i32) -> (i32, i32, i32) {
    %c0_i32 = arith.constant 0 : i32
    %c0_i32_0 = arith.constant 0 : i32
    %c0_i32_1 = arith.constant 0 : i32
    %c0_i32_2 = arith.constant 0 : i32
    return %c0_i32, %c0_i32_0, %c0_i32_1 : i32, i32, i32
  }
  func.func @transform_7(%arg0: i32) -> (i32, i32, i32) {
    %c0_i32 = arith.constant 0 : i32
    %c0_i32_0 = arith.constant 0 : i32
    %c0_i32_1 = arith.constant 0 : i32
    return %arg0, %c0_i32, %c0_i32_0 : i32, i32, i32
  }
}

module attributes {stable_mosaic.version = 11 : i64} {
  func.func @_ll_kernel(%arg0: i32, %arg1: memref<2x64xf32, #tpu.memory_space<vmem>>, %arg2: memref<2x64xf32, #tpu.memory_space<vmem>>, %arg3: memref<1x64xf32, #tpu.memory_space<vmem>>, %arg4: memref<1x64xf32, #tpu.memory_space<vmem>>, %arg5: memref<64x32xbf16, #tpu.memory_space<vmem>>, %arg6: memref<1x32xf32, #tpu.memory_space<vmem>>, %arg7: memref<64x32xbf16, #tpu.memory_space<vmem>>, %arg8: memref<1x32xf32, #tpu.memory_space<vmem>>, %arg9: memref<1x32xf32, #tpu.memory_space<vmem>>, %arg10: memref<1x32xf32, #tpu.memory_space<vmem>>, %arg11: memref<32x64xbf16, #tpu.memory_space<vmem>>, %arg12: memref<1x64xf32, #tpu.memory_space<vmem>>, %arg13: memref<1x64xf32, #tpu.memory_space<vmem>>, %arg14: memref<1x64xf32, #tpu.memory_space<vmem>>, %arg15: memref<3xf32, #tpu.memory_space<smem>>, %arg16: memref<2x64xf32, #tpu.memory_space<vmem>>) attributes {dimension_semantics = [#tpu.dimension_semantics<parallel>], iteration_bounds = array<i64: 1>, scalar_prefetch = 0 : i64, scratch_operands = 0 : i64, tpu.core_type = #tpu.core_type<tc>, window_params = [{transform_indices = @transform_0, window_bounds = array<i64: 2, 64>}, {transform_indices = @transform_1, window_bounds = array<i64: 2, 64>}, {pipeline_mode = #tpu.pipeline_mode<synchronous>, transform_indices = @transform_2, window_bounds = array<i64: 1, 64>}, {pipeline_mode = #tpu.pipeline_mode<synchronous>, transform_indices = @transform_3, window_bounds = array<i64: 1, 64>}, {pipeline_mode = #tpu.pipeline_mode<synchronous>, transform_indices = @transform_4, window_bounds = array<i64: 64, 32>}, {pipeline_mode = #tpu.pipeline_mode<synchronous>, transform_indices = @transform_5, window_bounds = array<i64: 1, 32>}, {pipeline_mode = #tpu.pipeline_mode<synchronous>, transform_indices = @transform_6, window_bounds = array<i64: 64, 32>}, {pipeline_mode = #tpu.pipeline_mode<synchronous>, transform_indices = @transform_7, window_bounds = array<i64: 1, 32>}, {pipeline_mode = #tpu.pipeline_mode<synchronous>, transform_indices = @transform_8, window_bounds = array<i64: 1, 32>}, {pipeline_mode = #tpu.pipeline_mode<synchronous>, transform_indices = @transform_9, window_bounds = array<i64: 1, 32>}, {pipeline_mode = #tpu.pipeline_mode<synchronous>, transform_indices = @transform_10, window_bounds = array<i64: 32, 64>}, {pipeline_mode = #tpu.pipeline_mode<synchronous>, transform_indices = @transform_11, window_bounds = array<i64: 1, 64>}, {pipeline_mode = #tpu.pipeline_mode<synchronous>, transform_indices = @transform_12, window_bounds = array<i64: 1, 64>}, {pipeline_mode = #tpu.pipeline_mode<synchronous>, transform_indices = @transform_13, window_bounds = array<i64: 1, 64>}, {transform_indices = @transform_14, window_bounds = array<i64: 3>}, {transform_indices = @transform_15, window_bounds = array<i64: 2, 64>}]} {
    %c0 = arith.constant 0 : index
    %c0_0 = arith.constant 0 : index
    %0 = vector.load %arg1[%c0, %c0_0] : memref<2x64xf32, #tpu.memory_space<vmem>>, vector<2x64xf32>
    %c0_1 = arith.constant 0 : index
    %c0_2 = arith.constant 0 : index
    %1 = vector.load %arg2[%c0_1, %c0_2] : memref<2x64xf32, #tpu.memory_space<vmem>>, vector<2x64xf32>
    %c0_3 = arith.constant 0 : index
    %c0_4 = arith.constant 0 : index
    %2 = vector.load %arg3[%c0_3, %c0_4] : memref<1x64xf32, #tpu.memory_space<vmem>>, vector<1x64xf32>
    %c0_5 = arith.constant 0 : index
    %c0_6 = arith.constant 0 : index
    %3 = vector.load %arg4[%c0_5, %c0_6] : memref<1x64xf32, #tpu.memory_space<vmem>>, vector<1x64xf32>
    %c0_7 = arith.constant 0 : index
    %c0_8 = arith.constant 0 : index
    %4 = vector.load %arg5[%c0_7, %c0_8] : memref<64x32xbf16, #tpu.memory_space<vmem>>, vector<64x32xbf16>
    %c0_9 = arith.constant 0 : index
    %c0_10 = arith.constant 0 : index
    %5 = vector.load %arg6[%c0_9, %c0_10] : memref<1x32xf32, #tpu.memory_space<vmem>>, vector<1x32xf32>
    %c0_11 = arith.constant 0 : index
    %c0_12 = arith.constant 0 : index
    %6 = vector.load %arg7[%c0_11, %c0_12] : memref<64x32xbf16, #tpu.memory_space<vmem>>, vector<64x32xbf16>
    %c0_13 = arith.constant 0 : index
    %c0_14 = arith.constant 0 : index
    %7 = vector.load %arg8[%c0_13, %c0_14] : memref<1x32xf32, #tpu.memory_space<vmem>>, vector<1x32xf32>
    %c0_15 = arith.constant 0 : index
    %c0_16 = arith.constant 0 : index
    %8 = vector.load %arg9[%c0_15, %c0_16] : memref<1x32xf32, #tpu.memory_space<vmem>>, vector<1x32xf32>
    %c0_17 = arith.constant 0 : index
    %c0_18 = arith.constant 0 : index
    %9 = vector.load %arg10[%c0_17, %c0_18] : memref<1x32xf32, #tpu.memory_space<vmem>>, vector<1x32xf32>
    %c0_19 = arith.constant 0 : index
    %c0_20 = arith.constant 0 : index
    %10 = vector.load %arg11[%c0_19, %c0_20] : memref<32x64xbf16, #tpu.memory_space<vmem>>, vector<32x64xbf16>
    %c0_21 = arith.constant 0 : index
    %c0_22 = arith.constant 0 : index
    %11 = vector.load %arg12[%c0_21, %c0_22] : memref<1x64xf32, #tpu.memory_space<vmem>>, vector<1x64xf32>
    %c0_23 = arith.constant 0 : index
    %c0_24 = arith.constant 0 : index
    %12 = vector.load %arg13[%c0_23, %c0_24] : memref<1x64xf32, #tpu.memory_space<vmem>>, vector<1x64xf32>
    %c0_25 = arith.constant 0 : index
    %c0_26 = arith.constant 0 : index
    %13 = vector.load %arg14[%c0_25, %c0_26] : memref<1x64xf32, #tpu.memory_space<vmem>>, vector<1x64xf32>
    %c0_27 = arith.constant 0 : index
    %14 = memref.load %arg15[%c0_27] : memref<3xf32, #tpu.memory_space<smem>>
    %c1 = arith.constant 1 : index
    %15 = memref.load %arg15[%c1] : memref<3xf32, #tpu.memory_space<smem>>
    %c2 = arith.constant 2 : index
    %16 = memref.load %arg15[%c2] : memref<3xf32, #tpu.memory_space<smem>>
    %cst = arith.constant dense<0.000000e+00> : vector<2xf32>
    %17 = vector.multi_reduction <add>, %0, %cst [1] : vector<2x64xf32> to vector<2xf32>
    %18 = vector.shape_cast %17 : vector<2xf32> to vector<2x1xf32>
    %cst_28 = arith.constant 6.400000e+01 : f32
    %19 = vector.broadcast %cst_28 : f32 to vector<2x1xf32>
    %20 = arith.divf %18, %19 : vector<2x1xf32>
    %21 = vector.broadcast %20 : vector<2x1xf32> to vector<2x64xf32>
    %22 = arith.subf %0, %21 : vector<2x64xf32>
    %23 = arith.mulf %22, %22 : vector<2x64xf32>
    %cst_29 = arith.constant dense<0.000000e+00> : vector<2xf32>
    %24 = vector.multi_reduction <add>, %23, %cst_29 [1] : vector<2x64xf32> to vector<2xf32>
    %25 = vector.shape_cast %24 : vector<2xf32> to vector<2x1xf32>
    %cst_30 = arith.constant 6.400000e+01 : f32
    %26 = vector.broadcast %cst_30 : f32 to vector<2x1xf32>
    %27 = arith.divf %25, %26 : vector<2x1xf32>
    %cst_31 = arith.constant 9.99999974E-6 : f32
    %28 = vector.broadcast %cst_31 : f32 to vector<2x1xf32>
    %29 = arith.addf %27, %28 : vector<2x1xf32>
    %30 = math.rsqrt %29 : vector<2x1xf32>
    %31 = vector.broadcast %30 : vector<2x1xf32> to vector<2x64xf32>
    %32 = arith.mulf %22, %31 : vector<2x64xf32>
    %33 = vector.broadcast %2 : vector<1x64xf32> to vector<2x64xf32>
    %34 = arith.mulf %32, %33 : vector<2x64xf32>
    %35 = vector.broadcast %3 : vector<1x64xf32> to vector<2x64xf32>
    %36 = arith.addf %34, %35 : vector<2x64xf32>
    %37 = arith.truncf %36 : vector<2x64xf32> to vector<2x64xbf16>
    %cst_32 = arith.constant dense<0.000000e+00> : vector<2x32xf32>
    %38 = tpu.matmul %37, %4, %cst_32 {dimension_numbers = #tpu.dot_dimension_numbers<[1], [0], [0], [1], [0, 0, 1, 1], [], []>} : vector<2x64xbf16>, vector<64x32xbf16>, vector<2x32xf32> -> vector<2x32xf32>
    %39 = vector.broadcast %5 : vector<1x32xf32> to vector<2x32xf32>
    %40 = arith.addf %38, %39 : vector<2x32xf32>
    %cst_33 = arith.constant 5.000000e-01 : f32
    %41 = vector.broadcast %cst_33 : f32 to vector<2x32xf32>
    %42 = arith.mulf %41, %40 : vector<2x32xf32>
    %cst_34 = arith.constant 4.471500e-02 : f32
    %43 = vector.broadcast %cst_34 : f32 to vector<2x32xf32>
    %44 = arith.mulf %43, %40 : vector<2x32xf32>
    %45 = arith.mulf %44, %40 : vector<2x32xf32>
    %46 = arith.mulf %45, %40 : vector<2x32xf32>
    %47 = arith.addf %40, %46 : vector<2x32xf32>
    %cst_35 = arith.constant 0.797884583 : f32
    %48 = vector.broadcast %cst_35 : f32 to vector<2x32xf32>
    %49 = arith.mulf %48, %47 : vector<2x32xf32>
    %50 = math.tanh %49 : vector<2x32xf32>
    %cst_36 = arith.constant 1.000000e+00 : f32
    %51 = vector.broadcast %cst_36 : f32 to vector<2x32xf32>
    %52 = arith.addf %51, %50 : vector<2x32xf32>
    %53 = arith.mulf %42, %52 : vector<2x32xf32>
    %cst_37 = arith.constant dense<0.000000e+00> : vector<2x32xf32>
    %54 = tpu.matmul %37, %6, %cst_37 {dimension_numbers = #tpu.dot_dimension_numbers<[1], [0], [0], [1], [0, 0, 1, 1], [], []>} : vector<2x64xbf16>, vector<64x32xbf16>, vector<2x32xf32> -> vector<2x32xf32>
    %55 = vector.broadcast %7 : vector<1x32xf32> to vector<2x32xf32>
    %56 = arith.addf %54, %55 : vector<2x32xf32>
    %cst_38 = arith.constant 5.000000e-01 : f32
    %57 = vector.broadcast %cst_38 : f32 to vector<2x32xf32>
    %58 = arith.mulf %57, %56 : vector<2x32xf32>
    %cst_39 = arith.constant 4.471500e-02 : f32
    %59 = vector.broadcast %cst_39 : f32 to vector<2x32xf32>
    %60 = arith.mulf %59, %56 : vector<2x32xf32>
    %61 = arith.mulf %60, %56 : vector<2x32xf32>
    %62 = arith.mulf %61, %56 : vector<2x32xf32>
    %63 = arith.addf %56, %62 : vector<2x32xf32>
    %cst_40 = arith.constant 0.797884583 : f32
    %64 = vector.broadcast %cst_40 : f32 to vector<2x32xf32>
    %65 = arith.mulf %64, %63 : vector<2x32xf32>
    %66 = math.tanh %65 : vector<2x32xf32>
    %cst_41 = arith.constant 1.000000e+00 : f32
    %67 = vector.broadcast %cst_41 : f32 to vector<2x32xf32>
    %68 = arith.addf %67, %66 : vector<2x32xf32>
    %69 = arith.mulf %58, %68 : vector<2x32xf32>
    %cst_42 = arith.constant dense<0.000000e+00> : vector<2xf32>
    %70 = vector.multi_reduction <add>, %69, %cst_42 [1] : vector<2x32xf32> to vector<2xf32>
    %71 = vector.shape_cast %70 : vector<2xf32> to vector<2x1xf32>
    %cst_43 = arith.constant 3.200000e+01 : f32
    %72 = vector.broadcast %cst_43 : f32 to vector<2x1xf32>
    %73 = arith.divf %71, %72 : vector<2x1xf32>
    %74 = vector.broadcast %73 : vector<2x1xf32> to vector<2x32xf32>
    %75 = arith.subf %69, %74 : vector<2x32xf32>
    %76 = arith.mulf %75, %75 : vector<2x32xf32>
    %cst_44 = arith.constant dense<0.000000e+00> : vector<2xf32>
    %77 = vector.multi_reduction <add>, %76, %cst_44 [1] : vector<2x32xf32> to vector<2xf32>
    %78 = vector.shape_cast %77 : vector<2xf32> to vector<2x1xf32>
    %cst_45 = arith.constant 3.200000e+01 : f32
    %79 = vector.broadcast %cst_45 : f32 to vector<2x1xf32>
    %80 = arith.divf %78, %79 : vector<2x1xf32>
    %cst_46 = arith.constant 9.99999974E-6 : f32
    %81 = vector.broadcast %cst_46 : f32 to vector<2x1xf32>
    %82 = arith.addf %80, %81 : vector<2x1xf32>
    %83 = math.rsqrt %82 : vector<2x1xf32>
    %84 = vector.broadcast %83 : vector<2x1xf32> to vector<2x32xf32>
    %85 = arith.mulf %75, %84 : vector<2x32xf32>
    %86 = vector.broadcast %8 : vector<1x32xf32> to vector<2x32xf32>
    %87 = arith.mulf %85, %86 : vector<2x32xf32>
    %88 = vector.broadcast %9 : vector<1x32xf32> to vector<2x32xf32>
    %89 = arith.addf %87, %88 : vector<2x32xf32>
    %90 = vector.broadcast %14 : f32 to vector<2x32xf32>
    %91 = arith.mulf %89, %90 : vector<2x32xf32>
    %92 = vector.broadcast %15 : f32 to vector<2x32xf32>
    %93 = arith.addf %91, %92 : vector<2x32xf32>
    %94 = arith.mulf %53, %93 : vector<2x32xf32>
    %95 = arith.truncf %94 : vector<2x32xf32> to vector<2x32xbf16>
    %cst_47 = arith.constant dense<0.000000e+00> : vector<2x64xf32>
    %96 = tpu.matmul %95, %10, %cst_47 {dimension_numbers = #tpu.dot_dimension_numbers<[1], [0], [0], [1], [0, 0, 1, 1], [], []>} : vector<2x32xbf16>, vector<32x64xbf16>, vector<2x64xf32> -> vector<2x64xf32>
    %97 = vector.broadcast %11 : vector<1x64xf32> to vector<2x64xf32>
    %98 = arith.addf %96, %97 : vector<2x64xf32>
    %cst_48 = arith.constant dense<0.000000e+00> : vector<2xf32>
    %99 = vector.multi_reduction <add>, %98, %cst_48 [1] : vector<2x64xf32> to vector<2xf32>
    %100 = vector.shape_cast %99 : vector<2xf32> to vector<2x1xf32>
    %cst_49 = arith.constant 6.400000e+01 : f32
    %101 = vector.broadcast %cst_49 : f32 to vector<2x1xf32>
    %102 = arith.divf %100, %101 : vector<2x1xf32>
    %103 = vector.broadcast %102 : vector<2x1xf32> to vector<2x64xf32>
    %104 = arith.subf %98, %103 : vector<2x64xf32>
    %105 = arith.mulf %104, %104 : vector<2x64xf32>
    %cst_50 = arith.constant dense<0.000000e+00> : vector<2xf32>
    %106 = vector.multi_reduction <add>, %105, %cst_50 [1] : vector<2x64xf32> to vector<2xf32>
    %107 = vector.shape_cast %106 : vector<2xf32> to vector<2x1xf32>
    %cst_51 = arith.constant 6.400000e+01 : f32
    %108 = vector.broadcast %cst_51 : f32 to vector<2x1xf32>
    %109 = arith.divf %107, %108 : vector<2x1xf32>
    %cst_52 = arith.constant 9.99999974E-6 : f32
    %110 = vector.broadcast %cst_52 : f32 to vector<2x1xf32>
    %111 = arith.addf %109, %110 : vector<2x1xf32>
    %112 = math.rsqrt %111 : vector<2x1xf32>
    %113 = vector.broadcast %112 : vector<2x1xf32> to vector<2x64xf32>
    %114 = arith.mulf %104, %113 : vector<2x64xf32>
    %115 = vector.broadcast %12 : vector<1x64xf32> to vector<2x64xf32>
    %116 = arith.mulf %114, %115 : vector<2x64xf32>
    %117 = vector.broadcast %13 : vector<1x64xf32> to vector<2x64xf32>
    %118 = arith.addf %116, %117 : vector<2x64xf32>
    %cst_53 = arith.constant 5.000000e-01 : f32
    %119 = vector.broadcast %cst_53 : f32 to vector<2x64xf32>
    %120 = arith.mulf %119, %118 : vector<2x64xf32>
    %cst_54 = arith.constant 4.471500e-02 : f32
    %121 = vector.broadcast %cst_54 : f32 to vector<2x64xf32>
    %122 = arith.mulf %121, %118 : vector<2x64xf32>
    %123 = arith.mulf %122, %118 : vector<2x64xf32>
    %124 = arith.mulf %123, %118 : vector<2x64xf32>
    %125 = arith.addf %118, %124 : vector<2x64xf32>
    %cst_55 = arith.constant 0.797884583 : f32
    %126 = vector.broadcast %cst_55 : f32 to vector<2x64xf32>
    %127 = arith.mulf %126, %125 : vector<2x64xf32>
    %128 = math.tanh %127 : vector<2x64xf32>
    %cst_56 = arith.constant 1.000000e+00 : f32
    %129 = vector.broadcast %cst_56 : f32 to vector<2x64xf32>
    %130 = arith.addf %129, %128 : vector<2x64xf32>
    %131 = arith.mulf %120, %130 : vector<2x64xf32>
    %132 = arith.addf %36, %131 : vector<2x64xf32>
    %cst_57 = arith.constant 5.000000e-01 : f32
    %133 = vector.broadcast %cst_57 : f32 to vector<2x64xf32>
    %134 = arith.mulf %132, %133 : vector<2x64xf32>
    %135 = vector.broadcast %16 : f32 to vector<2x64xf32>
    %136 = arith.mulf %134, %135 : vector<2x64xf32>
    %cst_58 = arith.constant 1.000000e+00 : f32
    %137 = arith.subf %cst_58, %16 : f32
    %138 = vector.broadcast %137 : f32 to vector<2x64xf32>
    %139 = arith.mulf %1, %138 : vector<2x64xf32>
    %140 = arith.addf %136, %139 : vector<2x64xf32>
    %c0_59 = arith.constant 0 : index
    %c0_60 = arith.constant 0 : index
    %141 = vector.load %arg16[%c0_59, %c0_60] : memref<2x64xf32, #tpu.memory_space<vmem>>, vector<2x64xf32>
    tpu.vector_store %arg16[%c0_59, %c0_60], %140 {strides = array<i32>} : memref<2x64xf32, #tpu.memory_space<vmem>>, vector<2x64xf32>,
    return
  }
  func.func @transform_0(%arg0: i32) -> (i32, i32) {
    %c0_i32 = arith.constant 0 : i32
    %c0_i32_0 = arith.constant 0 : i32
    return %arg0, %c0_i32 : i32, i32
  }
  func.func @transform_1(%arg0: i32) -> (i32, i32) {
    %c0_i32 = arith.constant 0 : i32
    %c0_i32_0 = arith.constant 0 : i32
    return %arg0, %c0_i32 : i32, i32
  }
  func.func @transform_2(%arg0: i32) -> (i32, i32) {
    %c0_i32 = arith.constant 0 : i32
    %c0_i32_0 = arith.constant 0 : i32
    %c0_i32_1 = arith.constant 0 : i32
    return %c0_i32, %c0_i32_0 : i32, i32
  }
  func.func @transform_3(%arg0: i32) -> (i32, i32) {
    %c0_i32 = arith.constant 0 : i32
    %c0_i32_0 = arith.constant 0 : i32
    %c0_i32_1 = arith.constant 0 : i32
    return %c0_i32, %c0_i32_0 : i32, i32
  }
  func.func @transform_4(%arg0: i32) -> (i32, i32) {
    %c0_i32 = arith.constant 0 : i32
    %c0_i32_0 = arith.constant 0 : i32
    %c0_i32_1 = arith.constant 0 : i32
    return %c0_i32, %c0_i32_0 : i32, i32
  }
  func.func @transform_5(%arg0: i32) -> (i32, i32) {
    %c0_i32 = arith.constant 0 : i32
    %c0_i32_0 = arith.constant 0 : i32
    %c0_i32_1 = arith.constant 0 : i32
    return %c0_i32, %c0_i32_0 : i32, i32
  }
  func.func @transform_6(%arg0: i32) -> (i32, i32) {
    %c0_i32 = arith.constant 0 : i32
    %c0_i32_0 = arith.constant 0 : i32
    %c0_i32_1 = arith.constant 0 : i32
    return %c0_i32, %c0_i32_0 : i32, i32
  }
  func.func @transform_7(%arg0: i32) -> (i32, i32) {
    %c0_i32 = arith.constant 0 : i32
    %c0_i32_0 = arith.constant 0 : i32
    %c0_i32_1 = arith.constant 0 : i32
    return %c0_i32, %c0_i32_0 : i32, i32
  }
  func.func @transform_8(%arg0: i32) -> (i32, i32) {
    %c0_i32 = arith.constant 0 : i32
    %c0_i32_0 = arith.constant 0 : i32
    %c0_i32_1 = arith.constant 0 : i32
    return %c0_i32, %c0_i32_0 : i32, i32
  }
  func.func @transform_9(%arg0: i32) -> (i32, i32) {
    %c0_i32 = arith.constant 0 : i32
    %c0_i32_0 = arith.constant 0 : i32
    %c0_i32_1 = arith.constant 0 : i32
    return %c0_i32, %c0_i32_0 : i32, i32
  }
  func.func @transform_10(%arg0: i32) -> (i32, i32) {
    %c0_i32 = arith.constant 0 : i32
    %c0_i32_0 = arith.constant 0 : i32
    %c0_i32_1 = arith.constant 0 : i32
    return %c0_i32, %c0_i32_0 : i32, i32
  }
  func.func @transform_11(%arg0: i32) -> (i32, i32) {
    %c0_i32 = arith.constant 0 : i32
    %c0_i32_0 = arith.constant 0 : i32
    %c0_i32_1 = arith.constant 0 : i32
    return %c0_i32, %c0_i32_0 : i32, i32
  }
  func.func @transform_12(%arg0: i32) -> (i32, i32) {
    %c0_i32 = arith.constant 0 : i32
    %c0_i32_0 = arith.constant 0 : i32
    %c0_i32_1 = arith.constant 0 : i32
    return %c0_i32, %c0_i32_0 : i32, i32
  }
  func.func @transform_13(%arg0: i32) -> (i32, i32) {
    %c0_i32 = arith.constant 0 : i32
    %c0_i32_0 = arith.constant 0 : i32
    %c0_i32_1 = arith.constant 0 : i32
    return %c0_i32, %c0_i32_0 : i32, i32
  }
  func.func @transform_14(%arg0: i32) -> i32 {
    %c0_i32 = arith.constant 0 : i32
    %c0_i32_0 = arith.constant 0 : i32
    return %c0_i32 : i32
  }
  func.func @transform_15(%arg0: i32) -> (i32, i32) {
    %c0_i32 = arith.constant 0 : i32
    %c0_i32_0 = arith.constant 0 : i32
    return %arg0, %c0_i32 : i32, i32
  }
}

module attributes {stable_mosaic.version = 11 : i64} {
  func.func @_be_kernel(%arg0: i32, %arg1: memref<2x4x16xf32, #tpu.memory_space<vmem>>, %arg2: memref<2x16x16xbf16, #tpu.memory_space<vmem>>, %arg3: memref<2x1x16xf32, #tpu.memory_space<vmem>>, %arg4: memref<1x1x16xf32, #tpu.memory_space<vmem>>, %arg5: memref<1x1x16xf32, #tpu.memory_space<vmem>>, %arg6: memref<2x4x16xf32, #tpu.memory_space<vmem>>) attributes {dimension_semantics = [#tpu.dimension_semantics<parallel>], iteration_bounds = array<i64: 1>, scalar_prefetch = 0 : i64, scratch_operands = 0 : i64, tpu.core_type = #tpu.core_type<tc>, window_params = [{transform_indices = @transform_0, window_bounds = array<i64: 2, 4, 16>}, {transform_indices = @transform_1, window_bounds = array<i64: 2, 16, 16>}, {transform_indices = @transform_2, window_bounds = array<i64: 2, 1, 16>}, {pipeline_mode = #tpu.pipeline_mode<synchronous>, transform_indices = @transform_3, window_bounds = array<i64: 1, 1, 16>}, {pipeline_mode = #tpu.pipeline_mode<synchronous>, transform_indices = @transform_4, window_bounds = array<i64: 1, 1, 16>}, {transform_indices = @transform_5, window_bounds = array<i64: 2, 4, 16>}]} {
    %c0 = arith.constant 0 : index
    %c0_0 = arith.constant 0 : index
    %c0_1 = arith.constant 0 : index
    %0 = vector.load %arg1[%c0, %c0_0, %c0_1] : memref<2x4x16xf32, #tpu.memory_space<vmem>>, vector<2x4x16xf32>
    %cst = arith.constant dense<0.000000e+00> : vector<2x4xf32>
    %1 = vector.multi_reduction <add>, %0, %cst [2] : vector<2x4x16xf32> to vector<2x4xf32>
    %2 = vector.shape_cast %1 : vector<2x4xf32> to vector<2x4x1xf32>
    %cst_2 = arith.constant 1.600000e+01 : f32
    %3 = vector.broadcast %cst_2 : f32 to vector<2x4x1xf32>
    %4 = arith.divf %2, %3 : vector<2x4x1xf32>
    %5 = vector.broadcast %4 : vector<2x4x1xf32> to vector<2x4x16xf32>
    %6 = arith.subf %0, %5 : vector<2x4x16xf32>
    %7 = arith.mulf %6, %6 : vector<2x4x16xf32>
    %cst_3 = arith.constant dense<0.000000e+00> : vector<2x4xf32>
    %8 = vector.multi_reduction <add>, %7, %cst_3 [2] : vector<2x4x16xf32> to vector<2x4xf32>
    %9 = vector.shape_cast %8 : vector<2x4xf32> to vector<2x4x1xf32>
    %cst_4 = arith.constant 1.600000e+01 : f32
    %10 = vector.broadcast %cst_4 : f32 to vector<2x4x1xf32>
    %11 = arith.divf %9, %10 : vector<2x4x1xf32>
    %cst_5 = arith.constant 9.99999974E-6 : f32
    %12 = vector.broadcast %cst_5 : f32 to vector<2x4x1xf32>
    %13 = arith.addf %11, %12 : vector<2x4x1xf32>
    %14 = math.rsqrt %13 : vector<2x4x1xf32>
    %15 = vector.broadcast %14 : vector<2x4x1xf32> to vector<2x4x16xf32>
    %16 = arith.mulf %6, %15 : vector<2x4x16xf32>
    %17 = arith.truncf %16 : vector<2x4x16xf32> to vector<2x4x16xbf16>
    %c0_6 = arith.constant 0 : index
    %c0_7 = arith.constant 0 : index
    %c0_8 = arith.constant 0 : index
    %18 = vector.load %arg2[%c0_6, %c0_7, %c0_8] : memref<2x16x16xbf16, #tpu.memory_space<vmem>>, vector<2x16x16xbf16>
    "tpu.trace_start"() <{level = 10 : i32, message = "nsv,nvw->nsw"}> : () -> ()
    %cst_9 = arith.constant dense<0.000000e+00> : vector<2x4x16xf32>
    %19 = tpu.matmul %17, %18, %cst_9 {dimension_numbers = #tpu.dot_dimension_numbers<[2], [1], [1], [2], [0, 0, 0, 1, 1, 2], [0], [0]>} : vector<2x4x16xbf16>, vector<2x16x16xbf16>, vector<2x4x16xf32> -> vector<2x4x16xf32>
    "tpu.trace_stop"() : () -> ()
    %c0_10 = arith.constant 0 : index
    %c0_11 = arith.constant 0 : index
    %c0_12 = arith.constant 0 : index
    %20 = vector.load %arg3[%c0_10, %c0_11, %c0_12] : memref<2x1x16xf32, #tpu.memory_space<vmem>>, vector<2x1x16xf32>
    %21 = vector.broadcast %20 : vector<2x1x16xf32> to vector<2x4x16xf32>
    %22 = arith.addf %19, %21 : vector<2x4x16xf32>
    %c0_13 = arith.constant 0 : index
    %c0_14 = arith.constant 0 : index
    %c0_15 = arith.constant 0 : index
    %23 = vector.load %arg4[%c0_13, %c0_14, %c0_15] : memref<1x1x16xf32, #tpu.memory_space<vmem>>, vector<1x1x16xf32>
    %c0_16 = arith.constant 0 : index
    %c0_17 = arith.constant 0 : index
    %c0_18 = arith.constant 0 : index
    %24 = vector.load %arg5[%c0_16, %c0_17, %c0_18] : memref<1x1x16xf32, #tpu.memory_space<vmem>>, vector<1x1x16xf32>
    %cst_19 = arith.constant dense<0.000000e+00> : vector<2x4xf32>
    %25 = vector.multi_reduction <add>, %22, %cst_19 [2] : vector<2x4x16xf32> to vector<2x4xf32>
    %26 = vector.shape_cast %25 : vector<2x4xf32> to vector<2x4x1xf32>
    %cst_20 = arith.constant 1.600000e+01 : f32
    %27 = vector.broadcast %cst_20 : f32 to vector<2x4x1xf32>
    %28 = arith.divf %26, %27 : vector<2x4x1xf32>
    %29 = vector.broadcast %28 : vector<2x4x1xf32> to vector<2x4x16xf32>
    %30 = arith.subf %22, %29 : vector<2x4x16xf32>
    %31 = arith.mulf %30, %30 : vector<2x4x16xf32>
    %cst_21 = arith.constant dense<0.000000e+00> : vector<2x4xf32>
    %32 = vector.multi_reduction <add>, %31, %cst_21 [2] : vector<2x4x16xf32> to vector<2x4xf32>
    %33 = vector.shape_cast %32 : vector<2x4xf32> to vector<2x4x1xf32>
    %cst_22 = arith.constant 1.600000e+01 : f32
    %34 = vector.broadcast %cst_22 : f32 to vector<2x4x1xf32>
    %35 = arith.divf %33, %34 : vector<2x4x1xf32>
    %cst_23 = arith.constant 9.99999974E-6 : f32
    %36 = vector.broadcast %cst_23 : f32 to vector<2x4x1xf32>
    %37 = arith.addf %35, %36 : vector<2x4x1xf32>
    %38 = math.rsqrt %37 : vector<2x4x1xf32>
    %39 = vector.broadcast %38 : vector<2x4x1xf32> to vector<2x4x16xf32>
    %40 = arith.mulf %30, %39 : vector<2x4x16xf32>
    %41 = vector.broadcast %23 : vector<1x1x16xf32> to vector<2x4x16xf32>
    %42 = arith.mulf %40, %41 : vector<2x4x16xf32>
    %43 = vector.broadcast %24 : vector<1x1x16xf32> to vector<2x4x16xf32>
    %44 = arith.addf %42, %43 : vector<2x4x16xf32>
    %cst_24 = arith.constant 5.000000e-01 : f32
    %45 = vector.broadcast %cst_24 : f32 to vector<2x4x16xf32>
    %46 = arith.mulf %45, %44 : vector<2x4x16xf32>
    %cst_25 = arith.constant 4.471500e-02 : f32
    %47 = vector.broadcast %cst_25 : f32 to vector<2x4x16xf32>
    %48 = arith.mulf %47, %44 : vector<2x4x16xf32>
    %49 = arith.mulf %48, %44 : vector<2x4x16xf32>
    %50 = arith.mulf %49, %44 : vector<2x4x16xf32>
    %51 = arith.addf %44, %50 : vector<2x4x16xf32>
    %cst_26 = arith.constant 0.797884583 : f32
    %52 = vector.broadcast %cst_26 : f32 to vector<2x4x16xf32>
    %53 = arith.mulf %52, %51 : vector<2x4x16xf32>
    %54 = math.tanh %53 : vector<2x4x16xf32>
    %cst_27 = arith.constant 1.000000e+00 : f32
    %55 = vector.broadcast %cst_27 : f32 to vector<2x4x16xf32>
    %56 = arith.addf %55, %54 : vector<2x4x16xf32>
    %57 = arith.mulf %46, %56 : vector<2x4x16xf32>
    %58 = arith.addf %16, %57 : vector<2x4x16xf32>
    %cst_28 = arith.constant 5.000000e-01 : f32
    %59 = vector.broadcast %cst_28 : f32 to vector<2x4x16xf32>
    %60 = arith.mulf %58, %59 : vector<2x4x16xf32>
    %c0_29 = arith.constant 0 : index
    %c0_30 = arith.constant 0 : index
    %c0_31 = arith.constant 0 : index
    %61 = vector.load %arg6[%c0_29, %c0_30, %c0_31] : memref<2x4x16xf32, #tpu.memory_space<vmem>>, vector<2x4x16xf32>
    tpu.vector_store %arg6[%c0_29, %c0_30, %c0_31], %60 {strides = array<i32>} : memref<2x4x16xf32, #tpu.memory_space<vmem>>, vector<2x4x16xf32>,
    return
  }
  func.func @transform_0(%arg0: i32) -> (i32, i32, i32) {
    %c0_i32 = arith.constant 0 : i32
    %c0_i32_0 = arith.constant 0 : i32
    %c0_i32_1 = arith.constant 0 : i32
    return %arg0, %c0_i32, %c0_i32_0 : i32, i32, i32
  }
  func.func @transform_1(%arg0: i32) -> (i32, i32, i32) {
    %c0_i32 = arith.constant 0 : i32
    %c0_i32_0 = arith.constant 0 : i32
    %c0_i32_1 = arith.constant 0 : i32
    return %arg0, %c0_i32, %c0_i32_0 : i32, i32, i32
  }
  func.func @transform_2(%arg0: i32) -> (i32, i32, i32) {
    %c0_i32 = arith.constant 0 : i32
    %c0_i32_0 = arith.constant 0 : i32
    %c0_i32_1 = arith.constant 0 : i32
    return %arg0, %c0_i32, %c0_i32_0 : i32, i32, i32
  }
  func.func @transform_3(%arg0: i32) -> (i32, i32, i32) {
    %c0_i32 = arith.constant 0 : i32
    %c0_i32_0 = arith.constant 0 : i32
    %c0_i32_1 = arith.constant 0 : i32
    %c0_i32_2 = arith.constant 0 : i32
    return %c0_i32, %c0_i32_0, %c0_i32_1 : i32, i32, i32
  }
  func.func @transform_4(%arg0: i32) -> (i32, i32, i32) {
    %c0_i32 = arith.constant 0 : i32
    %c0_i32_0 = arith.constant 0 : i32
    %c0_i32_1 = arith.constant 0 : i32
    %c0_i32_2 = arith.constant 0 : i32
    return %c0_i32, %c0_i32_0, %c0_i32_1 : i32, i32, i32
  }
  func.func @transform_5(%arg0: i32) -> (i32, i32, i32) {
    %c0_i32 = arith.constant 0 : i32
    %c0_i32_0 = arith.constant 0 : i32
    %c0_i32_1 = arith.constant 0 : i32
    return %arg0, %c0_i32, %c0_i32_0 : i32, i32, i32
  }
}

module attributes {stable_mosaic.version = 11 : i64} {
  func.func @_ll_kernel(%arg0: i32, %arg1: memref<2x64xf32, #tpu.memory_space<vmem>>, %arg2: memref<2x64xf32, #tpu.memory_space<vmem>>, %arg3: memref<1x64xf32, #tpu.memory_space<vmem>>, %arg4: memref<1x64xf32, #tpu.memory_space<vmem>>, %arg5: memref<64x32xbf16, #tpu.memory_space<vmem>>, %arg6: memref<1x32xf32, #tpu.memory_space<vmem>>, %arg7: memref<64x32xbf16, #tpu.memory_space<vmem>>, %arg8: memref<1x32xf32, #tpu.memory_space<vmem>>, %arg9: memref<1x32xf32, #tpu.memory_space<vmem>>, %arg10: memref<1x32xf32, #tpu.memory_space<vmem>>, %arg11: memref<32x64xbf16, #tpu.memory_space<vmem>>, %arg12: memref<1x64xf32, #tpu.memory_space<vmem>>, %arg13: memref<1x64xf32, #tpu.memory_space<vmem>>, %arg14: memref<1x64xf32, #tpu.memory_space<vmem>>, %arg15: memref<3xf32, #tpu.memory_space<smem>>, %arg16: memref<64x128xbf16, #tpu.memory_space<vmem>>, %arg17: memref<1x128xf32, #tpu.memory_space<vmem>>, %arg18: memref<2x128xf32, #tpu.memory_space<vmem>>) attributes {dimension_semantics = [#tpu.dimension_semantics<parallel>], iteration_bounds = array<i64: 1>, scalar_prefetch = 0 : i64, scratch_operands = 0 : i64, tpu.core_type = #tpu.core_type<tc>, window_params = [{transform_indices = @transform_0, window_bounds = array<i64: 2, 64>}, {transform_indices = @transform_1, window_bounds = array<i64: 2, 64>}, {pipeline_mode = #tpu.pipeline_mode<synchronous>, transform_indices = @transform_2, window_bounds = array<i64: 1, 64>}, {pipeline_mode = #tpu.pipeline_mode<synchronous>, transform_indices = @transform_3, window_bounds = array<i64: 1, 64>}, {pipeline_mode = #tpu.pipeline_mode<synchronous>, transform_indices = @transform_4, window_bounds = array<i64: 64, 32>}, {pipeline_mode = #tpu.pipeline_mode<synchronous>, transform_indices = @transform_5, window_bounds = array<i64: 1, 32>}, {pipeline_mode = #tpu.pipeline_mode<synchronous>, transform_indices = @transform_6, window_bounds = array<i64: 64, 32>}, {pipeline_mode = #tpu.pipeline_mode<synchronous>, transform_indices = @transform_7, window_bounds = array<i64: 1, 32>}, {pipeline_mode = #tpu.pipeline_mode<synchronous>, transform_indices = @transform_8, window_bounds = array<i64: 1, 32>}, {pipeline_mode = #tpu.pipeline_mode<synchronous>, transform_indices = @transform_9, window_bounds = array<i64: 1, 32>}, {pipeline_mode = #tpu.pipeline_mode<synchronous>, transform_indices = @transform_10, window_bounds = array<i64: 32, 64>}, {pipeline_mode = #tpu.pipeline_mode<synchronous>, transform_indices = @transform_11, window_bounds = array<i64: 1, 64>}, {pipeline_mode = #tpu.pipeline_mode<synchronous>, transform_indices = @transform_12, window_bounds = array<i64: 1, 64>}, {pipeline_mode = #tpu.pipeline_mode<synchronous>, transform_indices = @transform_13, window_bounds = array<i64: 1, 64>}, {transform_indices = @transform_14, window_bounds = array<i64: 3>}, {pipeline_mode = #tpu.pipeline_mode<synchronous>, transform_indices = @transform_15, window_bounds = array<i64: 64, 128>}, {pipeline_mode = #tpu.pipeline_mode<synchronous>, transform_indices = @transform_16, window_bounds = array<i64: 1, 128>}, {transform_indices = @transform_17, window_bounds = array<i64: 2, 128>}]} {
    %c0 = arith.constant 0 : index
    %c0_0 = arith.constant 0 : index
    %0 = vector.load %arg1[%c0, %c0_0] : memref<2x64xf32, #tpu.memory_space<vmem>>, vector<2x64xf32>
    %c0_1 = arith.constant 0 : index
    %c0_2 = arith.constant 0 : index
    %1 = vector.load %arg2[%c0_1, %c0_2] : memref<2x64xf32, #tpu.memory_space<vmem>>, vector<2x64xf32>
    %c0_3 = arith.constant 0 : index
    %c0_4 = arith.constant 0 : index
    %2 = vector.load %arg3[%c0_3, %c0_4] : memref<1x64xf32, #tpu.memory_space<vmem>>, vector<1x64xf32>
    %c0_5 = arith.constant 0 : index
    %c0_6 = arith.constant 0 : index
    %3 = vector.load %arg4[%c0_5, %c0_6] : memref<1x64xf32, #tpu.memory_space<vmem>>, vector<1x64xf32>
    %c0_7 = arith.constant 0 : index
    %c0_8 = arith.constant 0 : index
    %4 = vector.load %arg5[%c0_7, %c0_8] : memref<64x32xbf16, #tpu.memory_space<vmem>>, vector<64x32xbf16>
    %c0_9 = arith.constant 0 : index
    %c0_10 = arith.constant 0 : index
    %5 = vector.load %arg6[%c0_9, %c0_10] : memref<1x32xf32, #tpu.memory_space<vmem>>, vector<1x32xf32>
    %c0_11 = arith.constant 0 : index
    %c0_12 = arith.constant 0 : index
    %6 = vector.load %arg7[%c0_11, %c0_12] : memref<64x32xbf16, #tpu.memory_space<vmem>>, vector<64x32xbf16>
    %c0_13 = arith.constant 0 : index
    %c0_14 = arith.constant 0 : index
    %7 = vector.load %arg8[%c0_13, %c0_14] : memref<1x32xf32, #tpu.memory_space<vmem>>, vector<1x32xf32>
    %c0_15 = arith.constant 0 : index
    %c0_16 = arith.constant 0 : index
    %8 = vector.load %arg9[%c0_15, %c0_16] : memref<1x32xf32, #tpu.memory_space<vmem>>, vector<1x32xf32>
    %c0_17 = arith.constant 0 : index
    %c0_18 = arith.constant 0 : index
    %9 = vector.load %arg10[%c0_17, %c0_18] : memref<1x32xf32, #tpu.memory_space<vmem>>, vector<1x32xf32>
    %c0_19 = arith.constant 0 : index
    %c0_20 = arith.constant 0 : index
    %10 = vector.load %arg11[%c0_19, %c0_20] : memref<32x64xbf16, #tpu.memory_space<vmem>>, vector<32x64xbf16>
    %c0_21 = arith.constant 0 : index
    %c0_22 = arith.constant 0 : index
    %11 = vector.load %arg12[%c0_21, %c0_22] : memref<1x64xf32, #tpu.memory_space<vmem>>, vector<1x64xf32>
    %c0_23 = arith.constant 0 : index
    %c0_24 = arith.constant 0 : index
    %12 = vector.load %arg13[%c0_23, %c0_24] : memref<1x64xf32, #tpu.memory_space<vmem>>, vector<1x64xf32>
    %c0_25 = arith.constant 0 : index
    %c0_26 = arith.constant 0 : index
    %13 = vector.load %arg14[%c0_25, %c0_26] : memref<1x64xf32, #tpu.memory_space<vmem>>, vector<1x64xf32>
    %c0_27 = arith.constant 0 : index
    %14 = memref.load %arg15[%c0_27] : memref<3xf32, #tpu.memory_space<smem>>
    %c1 = arith.constant 1 : index
    %15 = memref.load %arg15[%c1] : memref<3xf32, #tpu.memory_space<smem>>
    %c2 = arith.constant 2 : index
    %16 = memref.load %arg15[%c2] : memref<3xf32, #tpu.memory_space<smem>>
    %cst = arith.constant dense<0.000000e+00> : vector<2xf32>
    %17 = vector.multi_reduction <add>, %0, %cst [1] : vector<2x64xf32> to vector<2xf32>
    %18 = vector.shape_cast %17 : vector<2xf32> to vector<2x1xf32>
    %cst_28 = arith.constant 6.400000e+01 : f32
    %19 = vector.broadcast %cst_28 : f32 to vector<2x1xf32>
    %20 = arith.divf %18, %19 : vector<2x1xf32>
    %21 = vector.broadcast %20 : vector<2x1xf32> to vector<2x64xf32>
    %22 = arith.subf %0, %21 : vector<2x64xf32>
    %23 = arith.mulf %22, %22 : vector<2x64xf32>
    %cst_29 = arith.constant dense<0.000000e+00> : vector<2xf32>
    %24 = vector.multi_reduction <add>, %23, %cst_29 [1] : vector<2x64xf32> to vector<2xf32>
    %25 = vector.shape_cast %24 : vector<2xf32> to vector<2x1xf32>
    %cst_30 = arith.constant 6.400000e+01 : f32
    %26 = vector.broadcast %cst_30 : f32 to vector<2x1xf32>
    %27 = arith.divf %25, %26 : vector<2x1xf32>
    %cst_31 = arith.constant 9.99999974E-6 : f32
    %28 = vector.broadcast %cst_31 : f32 to vector<2x1xf32>
    %29 = arith.addf %27, %28 : vector<2x1xf32>
    %30 = math.rsqrt %29 : vector<2x1xf32>
    %31 = vector.broadcast %30 : vector<2x1xf32> to vector<2x64xf32>
    %32 = arith.mulf %22, %31 : vector<2x64xf32>
    %33 = vector.broadcast %2 : vector<1x64xf32> to vector<2x64xf32>
    %34 = arith.mulf %32, %33 : vector<2x64xf32>
    %35 = vector.broadcast %3 : vector<1x64xf32> to vector<2x64xf32>
    %36 = arith.addf %34, %35 : vector<2x64xf32>
    %37 = arith.truncf %36 : vector<2x64xf32> to vector<2x64xbf16>
    %cst_32 = arith.constant dense<0.000000e+00> : vector<2x32xf32>
    %38 = tpu.matmul %37, %4, %cst_32 {dimension_numbers = #tpu.dot_dimension_numbers<[1], [0], [0], [1], [0, 0, 1, 1], [], []>} : vector<2x64xbf16>, vector<64x32xbf16>, vector<2x32xf32> -> vector<2x32xf32>
    %39 = vector.broadcast %5 : vector<1x32xf32> to vector<2x32xf32>
    %40 = arith.addf %38, %39 : vector<2x32xf32>
    %cst_33 = arith.constant 5.000000e-01 : f32
    %41 = vector.broadcast %cst_33 : f32 to vector<2x32xf32>
    %42 = arith.mulf %41, %40 : vector<2x32xf32>
    %cst_34 = arith.constant 4.471500e-02 : f32
    %43 = vector.broadcast %cst_34 : f32 to vector<2x32xf32>
    %44 = arith.mulf %43, %40 : vector<2x32xf32>
    %45 = arith.mulf %44, %40 : vector<2x32xf32>
    %46 = arith.mulf %45, %40 : vector<2x32xf32>
    %47 = arith.addf %40, %46 : vector<2x32xf32>
    %cst_35 = arith.constant 0.797884583 : f32
    %48 = vector.broadcast %cst_35 : f32 to vector<2x32xf32>
    %49 = arith.mulf %48, %47 : vector<2x32xf32>
    %50 = math.tanh %49 : vector<2x32xf32>
    %cst_36 = arith.constant 1.000000e+00 : f32
    %51 = vector.broadcast %cst_36 : f32 to vector<2x32xf32>
    %52 = arith.addf %51, %50 : vector<2x32xf32>
    %53 = arith.mulf %42, %52 : vector<2x32xf32>
    %cst_37 = arith.constant dense<0.000000e+00> : vector<2x32xf32>
    %54 = tpu.matmul %37, %6, %cst_37 {dimension_numbers = #tpu.dot_dimension_numbers<[1], [0], [0], [1], [0, 0, 1, 1], [], []>} : vector<2x64xbf16>, vector<64x32xbf16>, vector<2x32xf32> -> vector<2x32xf32>
    %55 = vector.broadcast %7 : vector<1x32xf32> to vector<2x32xf32>
    %56 = arith.addf %54, %55 : vector<2x32xf32>
    %cst_38 = arith.constant 5.000000e-01 : f32
    %57 = vector.broadcast %cst_38 : f32 to vector<2x32xf32>
    %58 = arith.mulf %57, %56 : vector<2x32xf32>
    %cst_39 = arith.constant 4.471500e-02 : f32
    %59 = vector.broadcast %cst_39 : f32 to vector<2x32xf32>
    %60 = arith.mulf %59, %56 : vector<2x32xf32>
    %61 = arith.mulf %60, %56 : vector<2x32xf32>
    %62 = arith.mulf %61, %56 : vector<2x32xf32>
    %63 = arith.addf %56, %62 : vector<2x32xf32>
    %cst_40 = arith.constant 0.797884583 : f32
    %64 = vector.broadcast %cst_40 : f32 to vector<2x32xf32>
    %65 = arith.mulf %64, %63 : vector<2x32xf32>
    %66 = math.tanh %65 : vector<2x32xf32>
    %cst_41 = arith.constant 1.000000e+00 : f32
    %67 = vector.broadcast %cst_41 : f32 to vector<2x32xf32>
    %68 = arith.addf %67, %66 : vector<2x32xf32>
    %69 = arith.mulf %58, %68 : vector<2x32xf32>
    %cst_42 = arith.constant dense<0.000000e+00> : vector<2xf32>
    %70 = vector.multi_reduction <add>, %69, %cst_42 [1] : vector<2x32xf32> to vector<2xf32>
    %71 = vector.shape_cast %70 : vector<2xf32> to vector<2x1xf32>
    %cst_43 = arith.constant 3.200000e+01 : f32
    %72 = vector.broadcast %cst_43 : f32 to vector<2x1xf32>
    %73 = arith.divf %71, %72 : vector<2x1xf32>
    %74 = vector.broadcast %73 : vector<2x1xf32> to vector<2x32xf32>
    %75 = arith.subf %69, %74 : vector<2x32xf32>
    %76 = arith.mulf %75, %75 : vector<2x32xf32>
    %cst_44 = arith.constant dense<0.000000e+00> : vector<2xf32>
    %77 = vector.multi_reduction <add>, %76, %cst_44 [1] : vector<2x32xf32> to vector<2xf32>
    %78 = vector.shape_cast %77 : vector<2xf32> to vector<2x1xf32>
    %cst_45 = arith.constant 3.200000e+01 : f32
    %79 = vector.broadcast %cst_45 : f32 to vector<2x1xf32>
    %80 = arith.divf %78, %79 : vector<2x1xf32>
    %cst_46 = arith.constant 9.99999974E-6 : f32
    %81 = vector.broadcast %cst_46 : f32 to vector<2x1xf32>
    %82 = arith.addf %80, %81 : vector<2x1xf32>
    %83 = math.rsqrt %82 : vector<2x1xf32>
    %84 = vector.broadcast %83 : vector<2x1xf32> to vector<2x32xf32>
    %85 = arith.mulf %75, %84 : vector<2x32xf32>
    %86 = vector.broadcast %8 : vector<1x32xf32> to vector<2x32xf32>
    %87 = arith.mulf %85, %86 : vector<2x32xf32>
    %88 = vector.broadcast %9 : vector<1x32xf32> to vector<2x32xf32>
    %89 = arith.addf %87, %88 : vector<2x32xf32>
    %90 = vector.broadcast %14 : f32 to vector<2x32xf32>
    %91 = arith.mulf %89, %90 : vector<2x32xf32>
    %92 = vector.broadcast %15 : f32 to vector<2x32xf32>
    %93 = arith.addf %91, %92 : vector<2x32xf32>
    %94 = arith.mulf %53, %93 : vector<2x32xf32>
    %95 = arith.truncf %94 : vector<2x32xf32> to vector<2x32xbf16>
    %cst_47 = arith.constant dense<0.000000e+00> : vector<2x64xf32>
    %96 = tpu.matmul %95, %10, %cst_47 {dimension_numbers = #tpu.dot_dimension_numbers<[1], [0], [0], [1], [0, 0, 1, 1], [], []>} : vector<2x32xbf16>, vector<32x64xbf16>, vector<2x64xf32> -> vector<2x64xf32>
    %97 = vector.broadcast %11 : vector<1x64xf32> to vector<2x64xf32>
    %98 = arith.addf %96, %97 : vector<2x64xf32>
    %cst_48 = arith.constant dense<0.000000e+00> : vector<2xf32>
    %99 = vector.multi_reduction <add>, %98, %cst_48 [1] : vector<2x64xf32> to vector<2xf32>
    %100 = vector.shape_cast %99 : vector<2xf32> to vector<2x1xf32>
    %cst_49 = arith.constant 6.400000e+01 : f32
    %101 = vector.broadcast %cst_49 : f32 to vector<2x1xf32>
    %102 = arith.divf %100, %101 : vector<2x1xf32>
    %103 = vector.broadcast %102 : vector<2x1xf32> to vector<2x64xf32>
    %104 = arith.subf %98, %103 : vector<2x64xf32>
    %105 = arith.mulf %104, %104 : vector<2x64xf32>
    %cst_50 = arith.constant dense<0.000000e+00> : vector<2xf32>
    %106 = vector.multi_reduction <add>, %105, %cst_50 [1] : vector<2x64xf32> to vector<2xf32>
    %107 = vector.shape_cast %106 : vector<2xf32> to vector<2x1xf32>
    %cst_51 = arith.constant 6.400000e+01 : f32
    %108 = vector.broadcast %cst_51 : f32 to vector<2x1xf32>
    %109 = arith.divf %107, %108 : vector<2x1xf32>
    %cst_52 = arith.constant 9.99999974E-6 : f32
    %110 = vector.broadcast %cst_52 : f32 to vector<2x1xf32>
    %111 = arith.addf %109, %110 : vector<2x1xf32>
    %112 = math.rsqrt %111 : vector<2x1xf32>
    %113 = vector.broadcast %112 : vector<2x1xf32> to vector<2x64xf32>
    %114 = arith.mulf %104, %113 : vector<2x64xf32>
    %115 = vector.broadcast %12 : vector<1x64xf32> to vector<2x64xf32>
    %116 = arith.mulf %114, %115 : vector<2x64xf32>
    %117 = vector.broadcast %13 : vector<1x64xf32> to vector<2x64xf32>
    %118 = arith.addf %116, %117 : vector<2x64xf32>
    %cst_53 = arith.constant 5.000000e-01 : f32
    %119 = vector.broadcast %cst_53 : f32 to vector<2x64xf32>
    %120 = arith.mulf %119, %118 : vector<2x64xf32>
    %cst_54 = arith.constant 4.471500e-02 : f32
    %121 = vector.broadcast %cst_54 : f32 to vector<2x64xf32>
    %122 = arith.mulf %121, %118 : vector<2x64xf32>
    %123 = arith.mulf %122, %118 : vector<2x64xf32>
    %124 = arith.mulf %123, %118 : vector<2x64xf32>
    %125 = arith.addf %118, %124 : vector<2x64xf32>
    %cst_55 = arith.constant 0.797884583 : f32
    %126 = vector.broadcast %cst_55 : f32 to vector<2x64xf32>
    %127 = arith.mulf %126, %125 : vector<2x64xf32>
    %128 = math.tanh %127 : vector<2x64xf32>
    %cst_56 = arith.constant 1.000000e+00 : f32
    %129 = vector.broadcast %cst_56 : f32 to vector<2x64xf32>
    %130 = arith.addf %129, %128 : vector<2x64xf32>
    %131 = arith.mulf %120, %130 : vector<2x64xf32>
    %132 = arith.addf %36, %131 : vector<2x64xf32>
    %cst_57 = arith.constant 5.000000e-01 : f32
    %133 = vector.broadcast %cst_57 : f32 to vector<2x64xf32>
    %134 = arith.mulf %132, %133 : vector<2x64xf32>
    %135 = vector.broadcast %16 : f32 to vector<2x64xf32>
    %136 = arith.mulf %134, %135 : vector<2x64xf32>
    %cst_58 = arith.constant 1.000000e+00 : f32
    %137 = arith.subf %cst_58, %16 : f32
    %138 = vector.broadcast %137 : f32 to vector<2x64xf32>
    %139 = arith.mulf %1, %138 : vector<2x64xf32>
    %140 = arith.addf %136, %139 : vector<2x64xf32>
    %141 = arith.truncf %140 : vector<2x64xf32> to vector<2x64xbf16>
    %c0_59 = arith.constant 0 : index
    %c0_60 = arith.constant 0 : index
    %142 = vector.load %arg16[%c0_59, %c0_60] : memref<64x128xbf16, #tpu.memory_space<vmem>>, vector<64x128xbf16>
    %cst_61 = arith.constant dense<0.000000e+00> : vector<2x128xf32>
    %143 = tpu.matmul %141, %142, %cst_61 {dimension_numbers = #tpu.dot_dimension_numbers<[1], [0], [0], [1], [0, 0, 1, 1], [], []>} : vector<2x64xbf16>, vector<64x128xbf16>, vector<2x128xf32> -> vector<2x128xf32>
    %c0_62 = arith.constant 0 : index
    %c0_63 = arith.constant 0 : index
    %144 = vector.load %arg17[%c0_62, %c0_63] : memref<1x128xf32, #tpu.memory_space<vmem>>, vector<1x128xf32>
    %145 = vector.broadcast %144 : vector<1x128xf32> to vector<2x128xf32>
    %146 = arith.addf %143, %145 : vector<2x128xf32>
    %c0_64 = arith.constant 0 : index
    %c0_65 = arith.constant 0 : index
    %147 = vector.load %arg18[%c0_64, %c0_65] : memref<2x128xf32, #tpu.memory_space<vmem>>, vector<2x128xf32>
    tpu.vector_store %arg18[%c0_64, %c0_65], %146 {strides = array<i32>} : memref<2x128xf32, #tpu.memory_space<vmem>>, vector<2x128xf32>,
    return
  }
  func.func @transform_0(%arg0: i32) -> (i32, i32) {
    %c0_i32 = arith.constant 0 : i32
    %c0_i32_0 = arith.constant 0 : i32
    return %arg0, %c0_i32 : i32, i32
  }
  func.func @transform_1(%arg0: i32) -> (i32, i32) {
    %c0_i32 = arith.constant 0 : i32
    %c0_i32_0 = arith.constant 0 : i32
    return %arg0, %c0_i32 : i32, i32
  }
  func.func @transform_2(%arg0: i32) -> (i32, i32) {
    %c0_i32 = arith.constant 0 : i32
    %c0_i32_0 = arith.constant 0 : i32
    %c0_i32_1 = arith.constant 0 : i32
    return %c0_i32, %c0_i32_0 : i32, i32
  }
  func.func @transform_3(%arg0: i32) -> (i32, i32) {
    %c0_i32 = arith.constant 0 : i32
    %c0_i32_0 = arith.constant 0 : i32
    %c0_i32_1 = arith.constant 0 : i32
    return %c0_i32, %c0_i32_0 : i32, i32
  }
  func.func @transform_4(%arg0: i32) -> (i32, i32) {
    %c0_i32 = arith.constant 0 : i32
    %c0_i32_0 = arith.constant 0 : i32
    %c0_i32_1 = arith.constant 0 : i32
    return %c0_i32, %c0_i32_0 : i32, i32
  }
  func.func @transform_5(%arg0: i32) -> (i32, i32) {
    %c0_i32 = arith.constant 0 : i32
    %c0_i32_0 = arith.constant 0 : i32
    %c0_i32_1 = arith.constant 0 : i32
    return %c0_i32, %c0_i32_0 : i32, i32
  }
  func.func @transform_6(%arg0: i32) -> (i32, i32) {
    %c0_i32 = arith.constant 0 : i32
    %c0_i32_0 = arith.constant 0 : i32
    %c0_i32_1 = arith.constant 0 : i32
    return %c0_i32, %c0_i32_0 : i32, i32
  }
  func.func @transform_7(%arg0: i32) -> (i32, i32) {
    %c0_i32 = arith.constant 0 : i32
    %c0_i32_0 = arith.constant 0 : i32
    %c0_i32_1 = arith.constant 0 : i32
    return %c0_i32, %c0_i32_0 : i32, i32
  }
  func.func @transform_8(%arg0: i32) -> (i32, i32) {
    %c0_i32 = arith.constant 0 : i32
    %c0_i32_0 = arith.constant 0 : i32
    %c0_i32_1 = arith.constant 0 : i32
    return %c0_i32, %c0_i32_0 : i32, i32
  }
  func.func @transform_9(%arg0: i32) -> (i32, i32) {
    %c0_i32 = arith.constant 0 : i32
    %c0_i32_0 = arith.constant 0 : i32
    %c0_i32_1 = arith.constant 0 : i32
    return %c0_i32, %c0_i32_0 : i32, i32
  }
  func.func @transform_10(%arg0: i32) -> (i32, i32) {
    %c0_i32 = arith.constant 0 : i32
    %c0_i32_0 = arith.constant 0 : i32
    %c0_i32_1 = arith.constant 0 : i32
    return %c0_i32, %c0_i32_0 : i32, i32
  }
  func.func @transform_11(%arg0: i32) -> (i32, i32) {
    %c0_i32 = arith.constant 0 : i32
    %c0_i32_0 = arith.constant 0 : i32
    %c0_i32_1 = arith.constant 0 : i32
    return %c0_i32, %c0_i32_0 : i32, i32
  }
  func.func @transform_12(%arg0: i32) -> (i32, i32) {
    %c0_i32 = arith.constant 0 : i32
    %c0_i32_0 = arith.constant 0 : i32
    %c0_i32_1 = arith.constant 0 : i32
    return %c0_i32, %c0_i32_0 : i32, i32
  }
  func.func @transform_13(%arg0: i32) -> (i32, i32) {
    %c0_i32 = arith.constant 0 : i32
    %c0_i32_0 = arith.constant 0 : i32
    %c0_i32_1 = arith.constant 0 : i32
    return %c0_i32, %c0_i32_0 : i32, i32
  }
  func.func @transform_14(%arg0: i32) -> i32 {
    %c0_i32 = arith.constant 0 : i32
    %c0_i32_0 = arith.constant 0 : i32
    return %c0_i32 : i32
  }
  func.func @transform_15(%arg0: i32) -> (i32, i32) {
    %c0_i32 = arith.constant 0 : i32
    %c0_i32_0 = arith.constant 0 : i32
    %c0_i32_1 = arith.constant 0 : i32
    return %c0_i32, %c0_i32_0 : i32, i32
  }
  func.func @transform_16(%arg0: i32) -> (i32, i32) {
    %c0_i32 = arith.constant 0 : i32
    %c0_i32_0 = arith.constant 0 : i32
    %c0_i32_1 = arith.constant 0 : i32
    return %c0_i32, %c0_i32_0 : i32, i32
  }
  func.func @transform_17(%arg0: i32) -> (i32, i32) {
    %c0_i32 = arith.constant 0 : i32
    %c0_i32_0 = arith.constant 0 : i32
    return %arg0, %c0_i32 : i32, i32
  }
}

</mosaic_0001>

<bundles_post_ra>
// kernel: mixed_model_forward.6
= control target key start
LH: loop header
LB: loop body
LE: loop exit
PB: predicated region body
PF: predicated region fallthrough
CT: control target
= control target key end

     0   :  { %vm23_vm0 = vcmask 125952   ;;  %v282_v14 = vmov 0.0   ;;  %vm283_vm1 = vmmov 0   ;;  %vm77_vm2 = vcmask 130048   ;;  %s364_s0 = inlined_call_operand.vmem [shape: f32[2,4,16], index: 0, kind: input, shape index: {}]   ;;  %s365_s1 = inlined_call_operand.vmem [shape: bf16[2,16,16], index: 1, kind: input, shape index: {}]   ;;  %s366_s2 = inlined_call_operand.vmem [shape: f32[2,1,16], index: 2, kind: input, shape index: {}]   ;;  %s367_s3 = inlined_call_operand.vmem [shape: f32[1,1,16], index: 3, kind: input, shape index: {}]   ;;  %s368_s4 = inlined_call_operand.vmem [shape: f32[1,1,16], index: 4, kind: input, shape index: {}]   ;;  %s369_s5 = inlined_call_operand.vmem [shape: f32[2,4,16], index: 5, kind: output, shape index: {}]  }
   0x1   :  { %v21_v0 = vld [vmem:[%s364_s0] sm:$0xf]  ;;  %v22_v1 = vld [vmem:[%s364_s0 + $0x4] sm:$0xf]  ;;  %254 = vmatprep.subr.bf16.mxu0 %v282_v14  ;;  %256 = vmatprep.mubr.msk.bf16.mxu0 %vm283_vm1, %v282_v14  ;;  %v269_v16 = vld [vmem:[%s365_s1 + $0x8] sm:$0xff]  }
   0x2   :  { %v24_v2 = vsel %vm23_vm0, %v21_v0, 0.0  ;;  %v27_v3 = vsel %vm23_vm0, %v22_v1, 0.0  ;;  %v268_v15 = vld [vmem:[%s365_s1] sm:$0xff]   ;;  %260 = vmatprep.subr.bf16.mxu1 %v282_v14  ;;  %262 = vmatprep.mubr.msk.bf16.mxu1 %vm283_vm1, %v282_v14 }
   0x3   :  { %25 = vadd.xlane.f32.xlu0 %v24_v2  ;;  %255 = vmatpush3.bf16.msra.mxu0 %v268_v15  ;;  %v242_v29 = vld [vmem:[%s366_s2] ss:$0 sm:$0xff]  ;;  %v243_v33 = vld [vmem:[%s366_s2 + $0x1] ss:$0 sm:$0xff] }
   0x4   :  { %261 = vmatpush3.bf16.msra.mxu1 %v269_v16  ;;  %v248_v60 = vld [vmem:[%s367_s3] ss:$0 sm:$0xff] }
   0x5   :  { %v249_v62 = vld [vmem:[%s368_s4] ss:$0 sm:$0xff] }
   0x7   :  { %28 = vadd.xlane.f32.xlu0 %v27_v3 }
  0x8c   :  { %v26_v4 = vpop.xlane.xlu0 %25 }
  0x8d   :  { %v31_v5 = vmul.f32 0.0625, %v26_v4 }
  0x8f   :  { %v33_v6 = vsub.f32 %v21_v0, %v31_v5 }
  0x90   :  { %v29_v7 = vpop.xlane.xlu0 %28 }
  0x91   :  { %v32_v8 = vmul.f32 0.0625, %v29_v7  ;;  %v35_v9 = vmul.f32 %v33_v6, %v33_v6 }
  0x93   :  { %v34_v10 = vsub.f32 %v22_v1, %v32_v8  ;;  %v37_v11 = vsel %vm23_vm0, %v35_v9, 0.0 }
  0x94   :  { %38 = vadd.xlane.f32.xlu1 %v37_v11 }
  0x95   :  { %v36_v12 = vmul.f32 %v34_v10, %v34_v10 }
  0x97   :  { %v40_v13 = vsel %vm23_vm0, %v36_v12, 0.0 }
  0x98   :  { %41 = vadd.xlane.f32.xlu1 %v40_v13 }
 0x11d   :  { %v39_v17 = vpop.xlane.xlu1 %38 }
 0x11e   :  { %v43_v18 = vmul.f32 0.0625, %v39_v17 }
 0x120   :  { %v45_v19 = vadd.f32 1e-05, %v43_v18 }
 0x121   :  { %v42_v20 = vpop.xlane.xlu1 %41 }
 0x122   :  { %270 = vrsqrt.f32 %v45_v19  ;;  %v44_v21 = vmul.f32 0.0625, %v42_v20 }
 0x124   :  { %v46_v22 = vadd.f32 1e-05, %v44_v21 }
 0x126   :  { %272 = vrsqrt.f32 %v46_v22 }
 0x12f   :  { %v271_v23 = vpop.eup %270 }
 0x130   :  { %v330_v24 = vmul.f32 %v271_v23, %v33_v6 }
 0x132   :  { %v51_v25 = vpack.c.bf16 %v330_v24, %v330_v24 }
 0x133   :  { %v273_v26 = vpop.eup %272 }
 0x134   :  { %257 = vmatmul.mubr.msk.bf16.vlgmr.msra.gmra.mxu0 %vm77_vm2, %v51_v25  ;;  %v334_v27 = vmul.f32 %v273_v26, %v34_v10 }
 0x136   :  { %v52_v28 = vpack.c.bf16 %v334_v27, %v334_v27 }
 0x138   :  { %263 = vmatmul.mubr.msk.bf16.vlgmr.msra.gmra.mxu1 %vm77_vm2, %v52_v28 }
 0x1f4   :  { %v115_v30 = vpop.f32.mrf.mxu0 }
 0x1f5   :  { %v116_v31 = vadd.f32 %v242_v29, %v115_v30 }
 0x1f6   :  { %v258_v32 = vpop.f32.mrf.mxu0 }
 0x1f7   :  { %v172_v34 = vsel %vm23_vm0, %v116_v31, 0.0 }
 0x1f8   :  { %173 = vadd.xlane.f32.xlu0 %v172_v34  ;;  %v118_v35 = vpop.f32.mrf.mxu0  ;;  %v164_v36 = vpop.f32.mrf.mxu1 }
 0x1f9   :  { %v165_v37 = vadd.f32 %v243_v33, %v164_v36 }
 0x1fa   :  { %v259_v38 = vpop.f32.mrf.mxu0  ;;  %v264_v39 = vpop.f32.mrf.mxu1 }
 0x1fb   :  { %v175_v40 = vsel %vm23_vm0, %v165_v37, 0.0 }
 0x1fc   :  { %176 = vadd.xlane.f32.xlu1 %v175_v40  ;;  %v167_v41 = vpop.f32.mrf.mxu1 }
 0x1fe   :  { %v265_v42 = vpop.f32.mrf.mxu1 }
 0x281   :  { %v174_v43 = vpop.xlane.xlu0 %173 }
 0x282   :  { %v178_v44 = vmul.f32 0.0625, %v174_v43 }
 0x284   :  { %v180_v45 = vsub.f32 %v116_v31, %v178_v44 }
 0x285   :  { %v177_v46 = vpop.xlane.xlu1 %176 }
 0x286   :  { %v179_v47 = vmul.f32 0.0625, %v177_v46  ;;  %v182_v48 = vmul.f32 %v180_v45, %v180_v45 }
 0x288   :  { %v181_v49 = vsub.f32 %v165_v37, %v179_v47  ;;  %v184_v50 = vsel %vm23_vm0, %v182_v48, 0.0 }
 0x289   :  { %185 = vadd.xlane.f32.xlu0 %v184_v50 }
 0x28a   :  { %v183_v51 = vmul.f32 %v181_v49, %v181_v49 }
 0x28c   :  { %v187_v52 = vsel %vm23_vm0, %v183_v51, 0.0 }
 0x28d   :  { %188 = vadd.xlane.f32.xlu1 %v187_v52 }
 0x312   :  { %v186_v53 = vpop.xlane.xlu0 %185 }
 0x313   :  { %v190_v54 = vmul.f32 0.0625, %v186_v53 }
 0x315   :  { %v192_v55 = vadd.f32 1e-05, %v190_v54 }
 0x316   :  { %v189_v56 = vpop.xlane.xlu1 %188 }
 0x317   :  { %274 = vrsqrt.f32 %v192_v55  ;;  %v191_v57 = vmul.f32 0.0625, %v189_v56 }
 0x319   :  { %v193_v58 = vadd.f32 1e-05, %v191_v57 }
 0x31b   :  { %276 = vrsqrt.f32 %v193_v58 }
 0x324   :  { %v275_v59 = vpop.eup %274 }
 0x325   :  { %v196_v61 = vmul.f32 %v275_v59, %v180_v45 }
 0x327   :  { %v204_v63 = vmul.f32 %v248_v60, %v196_v61 }
 0x328   :  { %v277_v0 = vpop.eup %276 }
 0x329   :  { %v212_v1 = vadd.f32 %v249_v62, %v204_v63  ;;  %v197_v2 = vmul.f32 %v277_v0, %v181_v49 }
 0x32b   :  { %v216_v3 = vmul.f32 0.044715, %v212_v1  ;;  %v205_v4 = vmul.f32 %v248_v60, %v197_v2  ;;  %v214_v16 = vmul.f32 0.5, %v212_v1 }
 0x32d   :  { %v218_v5 = vmul.f32 %v216_v3, %v212_v1  ;;  %v213_v6 = vadd.f32 %v249_v62, %v205_v4 }
 0x32f   :  { %v220_v7 = vmul.f32 %v218_v5, %v212_v1  ;;  %v217_v8 = vmul.f32 0.044715, %v213_v6  ;;  %v215_v21 = vmul.f32 0.5, %v213_v6 }
 0x331   :  { %v222_v9 = vadd.f32 %v220_v7, %v212_v1  ;;  %v219_v10 = vmul.f32 %v217_v8, %v213_v6 }
 0x333   :  { %v224_v11 = vmul.f32 0.7978846, %v222_v9  ;;  %v221_v12 = vmul.f32 %v219_v10, %v213_v6 }
 0x335   :  { %278 = vtanh.f32 %v224_v11  ;;  %v223_v13 = vadd.f32 %v221_v12, %v213_v6 }
 0x337   :  { %v225_v14 = vmul.f32 0.7978846, %v223_v13 }
 0x339   :  { %280 = vtanh.f32 %v225_v14 }
 0x342   :  { %v279_v15 = vpop.eup %278 }
 0x343   :  { %v228_v17 = vadd.f32 1.0, %v279_v15 }
 0x345   :  { %v230_v18 = vmul.f32 %v228_v17, %v214_v16 }
 0x346   :  { %v281_v19 = vpop.eup %280 }
 0x347   :  { %v232_v20 = vadd.f32 %v230_v18, %v330_v24  ;;  %v229_v22 = vadd.f32 1.0, %v281_v19 }
 0x349   :  { %v234_v23 = vmul.f32 0.5, %v232_v20  ;;  %v231_v25 = vmul.f32 %v229_v22, %v215_v21 }
 0x34b   :  { %236 = vst.msk [vmem:[%s369_s5] sm:$0xf] %vm23_vm0, %v234_v23  ;;  %v233_v26 = vadd.f32 %v231_v25, %v334_v27 }
 0x34d   :  { %v235_v28 = vmul.f32 0.5, %v233_v26 }
 0x34f   :  { %237 = vst.msk [vmem:[%s369_s5 + $0x4] sm:$0xf] %vm23_vm0, %v235_v28 }

// kernel: mixed_model_forward.4
= control target key start
LH: loop header
LB: loop body
LE: loop exit
PB: predicated region body
PF: predicated region fallthrough
CT: control target
= control target key end

     0   :  { %vm31_vm0 = vcmask 64512   ;;  %vm96_vm1 = vcmask 1043456   ;;  %v296_v14 = vmov 0.0   ;;  %vm297_vm2 = vmmov 0   ;;  %s396_s0 = inlined_call_operand.vmem [shape: f32[2,8,8], index: 0, kind: input, shape index: {}]   ;;  %s397_s1 = inlined_call_operand.vmem [shape: bf16[2,8,8], index: 1, kind: input, shape index: {}]   ;;  %s398_s3 = inlined_call_operand.vmem [shape: f32[1,1,8], index: 3, kind: input, shape index: {}]   ;;  %s399_s4 = inlined_call_operand.vmem [shape: f32[1,1,8], index: 4, kind: input, shape index: {}]   ;;  %s400_s2 = inlined_call_operand.vmem [shape: f32[2,1,8], index: 2, kind: input, shape index: {}]   ;;  %s401_s5 = inlined_call_operand.vmem [shape: f32[1,1,8], index: 5, kind: input, shape index: {}]   ;;  %s402_s6 = inlined_call_operand.vmem [shape: f32[1,1,8], index: 6, kind: input, shape index: {}]   ;;  %s403_s7 = inlined_call_operand.vmem [shape: f32[2,8,8], index: 7, kind: output, shape index: {}]  }
   0x1   :  { %v29_v0 = vld [vmem:[%s396_s0] sm:$0xff]  ;;  %v30_v1 = vld [vmem:[%s396_s0 + $0x8] sm:$0xff]  ;;  %270 = vmatprep.subr.bf16.mxu0 %v296_v14  ;;  %272 = vmatprep.mubr.msk.bf16.mxu0 %vm297_vm2, %v296_v14 }
   0x2   :  { %v32_v2 = vsel %vm31_vm0, %v29_v0, 0.0  ;;  %v35_v3 = vsel %vm31_vm0, %v30_v1, 0.0  ;;  %v77_v15 = vld [vmem:[%s397_s1] sm:$0xf]  ;;  %276 = vmatprep.subr.bf16.mxu1 %v296_v14  ;;  %278 = vmatprep.mubr.msk.bf16.mxu1 %vm297_vm2, %v296_v14  ;;  %v78_v17 = vld [vmem:[%s397_s1 + $0x4] sm:$0xf] }
   0x3   :  { %33 = vadd.xlane.f32.xlu0 %v32_v2  ;;  %v98_v16 = vsel %vm96_vm1, %v77_v15, 0  ;;  %v144_v18 = vsel %vm96_vm1, %v78_v17, 0  ;;  %v258_v26 = vld [vmem:[%s398_s3] ss:$0 sm:$0xff]  ;;  %v261_v41 = vld [vmem:[%s400_s2 + $0x1] ss:$0 sm:$0xff] }
   0x4   :  { %271 = vmatpush3.bf16.msra.mxu0 %v98_v16  ;;  %277 = vmatpush3.bf16.msra.mxu1 %v144_v18  ;;  %v259_v28 = vld [vmem:[%s399_s4] ss:$0 sm:$0xff] }
   0x5   :  { %v260_v37 = vld [vmem:[%s400_s2] ss:$0 sm:$0xff] }
   0x7   :  { %36 = vadd.xlane.f32.xlu0 %v35_v3 }
  0x8c   :  { %v34_v4 = vpop.xlane.xlu0 %33 }
  0x8d   :  { %v39_v5 = vmul.f32 0.125, %v34_v4  ;;  %v264_v4 = vld [vmem:[%s401_s5] ss:$0 sm:$0xff] }
  0x8f   :  { %v41_v6 = vsub.f32 %v29_v0, %v39_v5 }
  0x90   :  { %v37_v7 = vpop.xlane.xlu0 %36 }
  0x91   :  { %v40_v8 = vmul.f32 0.125, %v37_v7  ;;  %v43_v9 = vmul.f32 %v41_v6, %v41_v6 }
  0x93   :  { %v42_v10 = vsub.f32 %v30_v1, %v40_v8  ;;  %v45_v11 = vsel %vm31_vm0, %v43_v9, 0.0 }
  0x94   :  { %46 = vadd.xlane.f32.xlu1 %v45_v11 }
  0x95   :  { %v44_v12 = vmul.f32 %v42_v10, %v42_v10 }
  0x97   :  { %v48_v13 = vsel %vm31_vm0, %v44_v12, 0.0 }
  0x98   :  { %49 = vadd.xlane.f32.xlu1 %v48_v13 }
 0x11d   :  { %v47_v19 = vpop.xlane.xlu1 %46 }
 0x11e   :  { %v51_v20 = vmul.f32 0.125, %v47_v19 }
 0x120   :  { %v53_v21 = vadd.f32 1e-05, %v51_v20 }
 0x121   :  { %v50_v22 = vpop.xlane.xlu1 %49 }
 0x122   :  { %284 = vrsqrt.f32 %v53_v21  ;;  %v52_v23 = vmul.f32 0.125, %v50_v22 }
 0x124   :  { %v54_v24 = vadd.f32 1e-05, %v52_v23 }
 0x126   :  { %286 = vrsqrt.f32 %v54_v24 }
 0x12f   :  { %v285_v25 = vpop.eup %284 }
 0x130   :  { %v57_v27 = vmul.f32 %v285_v25, %v41_v6  ;;  %v265_v6 = vld [vmem:[%s402_s6] ss:$0 sm:$0xff] }
 0x132   :  { %v65_v29 = vmul.f32 %v258_v26, %v57_v27 }
 0x133   :  { %v287_v30 = vpop.eup %286 }
 0x134   :  { %v360_v31 = vadd.f32 %v259_v28, %v65_v29  ;;  %v58_v32 = vmul.f32 %v287_v30, %v42_v10 }
 0x136   :  { %v75_v33 = vpack.c.bf16 %v360_v31, %v360_v31  ;;  %v66_v34 = vmul.f32 %v258_v26, %v58_v32 }
 0x138   :  { %273 = vmatmul.mubr.msk.bf16.vlgmr.msra.gmra.mxu0 %vm31_vm0, %v75_v33  ;;  %v365_v35 = vadd.f32 %v259_v28, %v66_v34 }
 0x13a   :  { %v76_v36 = vpack.c.bf16 %v365_v35, %v365_v35 }
 0x13c   :  { %279 = vmatmul.mubr.msk.bf16.vlgmr.msra.gmra.mxu1 %vm31_vm0, %v76_v36 }
 0x1f8   :  { %v134_v38 = vpop.f32.mrf.mxu0 }
 0x1f9   :  { %v135_v39 = vadd.f32 %v260_v37, %v134_v38 }
 0x1fa   :  { %v274_v40 = vpop.f32.mrf.mxu0 }
 0x1fb   :  { %v188_v42 = vsel %vm31_vm0, %v135_v39, 0.0 }
 0x1fc   :  { %189 = vadd.xlane.f32.xlu0 %v188_v42  ;;  %v137_v43 = vpop.f32.mrf.mxu0  ;;  %v180_v44 = vpop.f32.mrf.mxu1 }
 0x1fd   :  { %v181_v45 = vadd.f32 %v261_v41, %v180_v44 }
 0x1fe   :  { %v275_v46 = vpop.f32.mrf.mxu0  ;;  %v280_v47 = vpop.f32.mrf.mxu1 }
 0x1ff   :  { %v191_v48 = vsel %vm31_vm0, %v181_v45, 0.0 }
 0x200   :  { %192 = vadd.xlane.f32.xlu1 %v191_v48  ;;  %v183_v49 = vpop.f32.mrf.mxu1 }
 0x202   :  { %v281_v50 = vpop.f32.mrf.mxu1 }
 0x285   :  { %v190_v51 = vpop.xlane.xlu0 %189 }
 0x286   :  { %v194_v52 = vmul.f32 0.125, %v190_v51 }
 0x288   :  { %v196_v53 = vsub.f32 %v135_v39, %v194_v52 }
 0x289   :  { %v193_v54 = vpop.xlane.xlu1 %192 }
 0x28a   :  { %v195_v55 = vmul.f32 0.125, %v193_v54  ;;  %v198_v56 = vmul.f32 %v196_v53, %v196_v53 }
 0x28c   :  { %v197_v57 = vsub.f32 %v181_v45, %v195_v55  ;;  %v200_v58 = vsel %vm31_vm0, %v198_v56, 0.0 }
 0x28d   :  { %201 = vadd.xlane.f32.xlu0 %v200_v58 }
 0x28e   :  { %v199_v59 = vmul.f32 %v197_v57, %v197_v57 }
 0x290   :  { %v203_v60 = vsel %vm31_vm0, %v199_v59, 0.0 }
 0x291   :  { %204 = vadd.xlane.f32.xlu1 %v203_v60 }
 0x316   :  { %v202_v61 = vpop.xlane.xlu0 %201 }
 0x317   :  { %v206_v62 = vmul.f32 0.125, %v202_v61 }
 0x319   :  { %v208_v63 = vadd.f32 1e-05, %v206_v62 }
 0x31a   :  { %v205_v0 = vpop.xlane.xlu1 %204 }
 0x31b   :  { %288 = vrsqrt.f32 %v208_v63  ;;  %v207_v1 = vmul.f32 0.125, %v205_v0 }
 0x31d   :  { %v209_v2 = vadd.f32 1e-05, %v207_v1 }
 0x31f   :  { %290 = vrsqrt.f32 %v209_v2 }
 0x328   :  { %v289_v3 = vpop.eup %288 }
 0x329   :  { %v212_v5 = vmul.f32 %v289_v3, %v196_v53 }
 0x32b   :  { %v220_v7 = vmul.f32 %v264_v4, %v212_v5 }
 0x32c   :  { %v291_v8 = vpop.eup %290 }
 0x32d   :  { %v228_v9 = vadd.f32 %v265_v6, %v220_v7  ;;  %v213_v10 = vmul.f32 %v291_v8, %v197_v57 }
 0x32f   :  { %v232_v11 = vmul.f32 0.044715, %v228_v9  ;;  %v221_v12 = vmul.f32 %v264_v4, %v213_v10  ;;  %v230_v24 = vmul.f32 0.5, %v228_v9 }
 0x331   :  { %v234_v13 = vmul.f32 %v232_v11, %v228_v9  ;;  %v229_v14 = vadd.f32 %v265_v6, %v221_v12 }
 0x333   :  { %v236_v15 = vmul.f32 %v234_v13, %v228_v9  ;;  %v233_v16 = vmul.f32 0.044715, %v229_v14  ;;  %v231_v29 = vmul.f32 0.5, %v229_v14 }
 0x335   :  { %v238_v17 = vadd.f32 %v236_v15, %v228_v9  ;;  %v235_v18 = vmul.f32 %v233_v16, %v229_v14 }
 0x337   :  { %v240_v19 = vmul.f32 0.7978846, %v238_v17  ;;  %v237_v20 = vmul.f32 %v235_v18, %v229_v14 }
 0x339   :  { %292 = vtanh.f32 %v240_v19  ;;  %v239_v21 = vadd.f32 %v237_v20, %v229_v14 }
 0x33b   :  { %v241_v22 = vmul.f32 0.7978846, %v239_v21 }
 0x33d   :  { %294 = vtanh.f32 %v241_v22 }
 0x346   :  { %v293_v23 = vpop.eup %292 }
 0x347   :  { %v244_v25 = vadd.f32 1.0, %v293_v23 }
 0x349   :  { %v246_v26 = vmul.f32 %v244_v25, %v230_v24 }
 0x34a   :  { %v295_v27 = vpop.eup %294 }
 0x34b   :  { %v248_v28 = vadd.f32 %v246_v26, %v360_v31  ;;  %v245_v30 = vadd.f32 1.0, %v295_v27 }
 0x34d   :  { %v250_v32 = vmul.f32 0.5, %v248_v28  ;;  %v247_v33 = vmul.f32 %v245_v30, %v231_v29 }
 0x34f   :  { %252 = vst.msk [vmem:[%s403_s7] sm:$0xff] %vm31_vm0, %v250_v32  ;;  %v249_v34 = vadd.f32 %v247_v33, %v365_v35 }
 0x351   :  { %v251_v36 = vmul.f32 0.5, %v249_v34 }
 0x353   :  { %253 = vst.msk [vmem:[%s403_s7 + $0x8] sm:$0xff] %vm31_vm0, %v251_v36 }

// kernel: mixed_model_forward.5
= control target key start
LH: loop header
LB: loop body
LE: loop exit
PB: predicated region body
PF: predicated region fallthrough
CT: control target
= control target key end

     0   :  { %20 = vsyncpa [#allocation3], 0  ;;  %s723_s0 = inlined_call_operand.vmem [shape: f32[2,64], index: 0, kind: input, shape index: {}]   ;;  %s724_s1 = inlined_call_operand.vmem [shape: f32[2,64], index: 1, kind: input, shape index: {}]   ;;  %s725_s2 = inlined_call_operand.vmem [shape: f32[1,64], index: 2, kind: input, shape index: {}]   ;;  %s726_s3 = inlined_call_operand.vmem [shape: f32[1,64], index: 3, kind: input, shape index: {}]   ;;  %s727_s4 = inlined_call_operand.vmem [shape: bf16[64,32], index: 4, kind: input, shape index: {}]   ;;  %s728_s5 = inlined_call_operand.vmem [shape: f32[1,32], index: 5, kind: input, shape index: {}]   ;;  %s729_s6 = inlined_call_operand.vmem [shape: bf16[64,32], index: 6, kind: input, shape index: {}]   ;;  %s730_s7 = inlined_call_operand.vmem [shape: f32[1,32], index: 7, kind: input, shape index: {}]   ;;  %s731_s8 = inlined_call_operand.vmem [shape: f32[1,32], index: 8, kind: input, shape index: {}]   ;;  %s732_s9 = inlined_call_operand.vmem [shape: f32[1,32], index: 9, kind: input, shape index: {}]   ;;  %s733_s10 = inlined_call_operand.vmem [shape: bf16[32,64], index: 10, kind: input, shape index: {}]   ;;  %s734_s11 = inlined_call_operand.vmem [shape: f32[1,64], index: 11, kind: input, shape index: {}]   ;;  %s735_s12 = inlined_call_operand.vmem [shape: f32[1,64], index: 12, kind: input, shape index: {}]   ;;  %s736_s13 = inlined_call_operand.vmem [shape: f32[1,64], index: 13, kind: input, shape index: {}]   ;;  %s737_s14 = inlined_call_operand.vmem [shape: f32[3], index: 14, kind: input, shape index: {}]   ;;  %s738_s15 = inlined_call_operand.vmem [shape: f32[2,64], index: 15, kind: output, shape index: {}]  }
   0x1   :  { %s55_s20 = sshll.u32 %s737_s14, 4  ;;  %s56_s20 = int_to_ptr.vmem [resolvable:$true] %s55_s20 }
   0x2   :  { %s531_s21 = scalar_lea.vmem %s56_s20, 16  ;;  %p536_p1 = scmp.lt.s32.totalorder %s56_s20, %s56_s20 }
   0x3   :  { %p532_p0 = scmp.ne.s32.totalorder %s56_s20, %s531_s21  ;;  %p537_p2 = scmp.lt.s32.totalorder %s531_s21, %s531_s21 }
   0x5   :  { %p538_p3 = por %p537_p2, %p536_p1 }
   0x7   :  { %p539_p4 = pnand %p538_p3, %p532_p0 }
   0x9   :  { %542 = shalt.err (!%p539_p4)
}
   0xa   :  { %s545_s22 = smov [#allocation2]  }
   0xb   :  { %58 = dma.vmem_to_smem %s56_s20, 16, %s545_s22, [#allocation3]  }
   0xc   :  { %543 = dma.done.wait [#allocation3], 16  }
   0xd   :  { %544 = vsyncadd [#allocation3], 4294967280 }
   0xe   :  { %62 = sfence }
   0xf   :  { %v64_v0 = vld [vmem:[%s723_s0] sm:$0x3]  ;;  %vm98_vm0 = vcmask 517120   ;;  %v509_v7 = vld [vmem:[%s727_s4 + $0x18] sm:$0xff]   ;;  %v546_v9 = vmov 0.0   ;;  %v511_v10 = vld [vmem:[%s727_s4 + $0x10] sm:$0xff]  }
  0x10   :  { %v99_v1 = vsel %vm98_vm0, %v64_v0, 0.0  ;;  %v510_v8 = vld [vmem:[%s729_s6 + $0x18] sm:$0xff]   ;;  %474 = vmatprep.subr.bf16.mxu0 %v546_v9  ;;  %486 = vmatprep.subr.bf16.mxu1 %v546_v9  ;;  %v512_v11 = vld [vmem:[%s729_s6 + $0x10] sm:$0xff]   ;;  %vm547_vm1 = vmmov 0   ;;  %v513_v12 = vld [vmem:[%s727_s4 + $0x8] sm:$0xff]   ;;  %vm158_vm2 = vcmask 523264  }
  0x11   :  { %100 = vadd.xlane.f32.xlu0 %v99_v1  ;;  %475 = vmatpush3.bf16.msra.mxu0 %v509_v7  ;;  %v514_v13 = vld [vmem:[%s729_s6 + $0x8] sm:$0xff]   ;;  %v515_v14 = vld [vmem:[%s727_s4] sm:$0xff]   ;;  %vm290_vm3 = vcmask 254976   ;;  %s95_s29 = sld [smem:[#allocation2]]  ;;  %vm343_vm4 = vcmask 261120  }
  0x12   :  { %487 = vmatpush3.bf16.msra.mxu1 %v510_v8  ;;  %476 = vmatprep.subr.bf16.mxu0 %v546_v9  ;;  %v516_v15 = vld [vmem:[%s729_s6] sm:$0xff]   ;;  %v517_v51 = vld [vmem:[%s733_s10 + $0x8] sm:$0xff]   ;;  %s438_s21 = sld [smem:[#allocation2 + $0x2]] }
  0x13   :  { %488 = vmatprep.subr.bf16.mxu1 %v546_v9  ;;  %482 = vmatprep.mubr.msk.bf16.mxu0 %vm547_vm1, %v546_v9  ;;  %v439_v20 = vld [vmem:[%s725_s2] ss:$0 sm:$0xff] }
  0x14   :  { %494 = vmatprep.mubr.msk.bf16.mxu1 %vm547_vm1, %v546_v9  ;;  %v440_v22 = vld [vmem:[%s726_s3] ss:$0 sm:$0xff] }
  0x15   :  { %477 = vmatpush3.bf16.msra.mxu0 %v511_v10  ;;  %v447_v26 = vld [vmem:[%s730_s7] ss:$0 sm:$0xff] }
  0x16   :  { %489 = vmatpush3.bf16.msra.mxu1 %v512_v11  ;;  %478 = vmatprep.subr.bf16.mxu0 %v546_v9  ;;  %v518_v52 = vld [vmem:[%s733_s10] sm:$0xff]   ;;  %s437_s10 = sld [smem:[#allocation2 + $0x1]] }
  0x17   :  { %490 = vmatprep.subr.bf16.mxu1 %v546_v9  ;;  %v441_v53 = vld [vmem:[%s728_s5] ss:$0 sm:$0xff] }
  0x18   :  { %s427_s22 = ssub.f32 1.0, %s438_s21 }
  0x19   :  { %479 = vmatpush3.bf16.msra.mxu0 %v513_v12 }
  0x1a   :  { %491 = vmatpush3.bf16.msra.mxu1 %v514_v13  ;;  %480 = vmatprep.subr.bf16.mxu0 %v546_v9 }
  0x1b   :  { %492 = vmatprep.subr.bf16.mxu1 %v546_v9 }
  0x1c   :  { %v321_v8 = vstv %s437_s10 }
  0x1d   :  { %481 = vmatpush3.bf16.msra.mxu0 %v515_v14 }
  0x1e   :  { %493 = vmatpush3.bf16.msra.mxu1 %v516_v15  ;;  %498 = vmatprep.subr.bf16.mxu0 %v546_v9  ;;  %v455_v15 = vld [vmem:[%s734_s11] ss:$0 sm:$0xff] }
  0x9a   :  { %v101_v2 = vpop.xlane.xlu0 %100 }
  0x9b   :  { %v103_v3 = vmul.f32 0.015625, %v101_v2 }
  0x9d   :  { %v104_v4 = vsub.f32 %v64_v0, %v103_v3  ;;  %v453_v0 = vld [vmem:[%s731_s8] ss:$0 sm:$0xff] }
  0x9e   :  { %v454_v3 = vld [vmem:[%s732_s9] ss:$0 sm:$0xff] }
  0x9f   :  { %v105_v5 = vmul.f32 %v104_v4, %v104_v4 }
  0xa1   :  { %v106_v6 = vsel %vm98_vm0, %v105_v5, 0.0  ;;  %v319_v5 = vstv %s95_s29 }
  0xa2   :  { %107 = vadd.xlane.f32.xlu0 %v106_v6 }
 0x12b   :  { %v108_v16 = vpop.xlane.xlu0 %107 }
 0x12c   :  { %v109_v17 = vmul.f32 0.015625, %v108_v16 }
 0x12e   :  { %v110_v18 = vadd.f32 1e-05, %v109_v17 }
 0x130   :  { %519 = vrsqrt.f32 %v110_v18 }
 0x13d   :  { %v520_v19 = vpop.eup %519 }
 0x13e   :  { %v112_v21 = vmul.f32 %v520_v19, %v104_v4 }
 0x140   :  { %v119_v23 = vmul.f32 %v439_v20, %v112_v21 }
 0x142   :  { %v679_v24 = vadd.f32 %v440_v22, %v119_v23 }
 0x144   :  { %v127_v25 = vpack.c.bf16 %v679_v24, %v679_v24 }
 0x146   :  { %483 = vmatmul.mubr.msk.bf16.vlgmr.msra.gmra.mxu0 %vm158_vm2, %v127_v25  ;;  %495 = vmatmul.mubr.msk.bf16.vlgmr.msra.gmra.mxu1 %vm158_vm2, %v127_v25 }
 0x147   :  { %502 = vmatprep.mubr.msk.bf16.mxu0 %vm547_vm1, %v546_v9  ;;  %499 = vmatpush3.bf16.msra.mxu0 %v517_v51 }
 0x148   :  { %500 = vmatprep.subr.bf16.mxu0 %v546_v9 }
 0x14b   :  { %501 = vmatpush3.bf16.msra.mxu0 %v518_v52 }
 0x206   :  { %v196_v27 = vpop.f32.mrf.mxu0  ;;  %v275_v28 = vpop.f32.mrf.mxu1 }
 0x207   :  { %v276_v29 = vadd.f32 %v447_v26, %v275_v28  ;;  %v197_v54 = vadd.f32 %v441_v53, %v196_v27 }
 0x208   :  { %v484_v30 = vpop.f32.mrf.mxu0  ;;  %v496_v31 = vpop.f32.mrf.mxu1 }
 0x209   :  { %v282_v32 = vmul.f32 0.044715, %v276_v29  ;;  %v281_v42 = vmul.f32 0.5, %v276_v29  ;;  %v203_v55 = vmul.f32 0.044715, %v197_v54  ;;  %v202_v9 = vmul.f32 0.5, %v197_v54 }
 0x20a   :  { %v199_v33 = vpop.f32.mrf.mxu0  ;;  %v278_v34 = vpop.f32.mrf.mxu1 }
 0x20b   :  { %v283_v35 = vmul.f32 %v282_v32, %v276_v29  ;;  %v204_v56 = vmul.f32 %v203_v55, %v197_v54  ;;  %v459_v32 = vld [vmem:[%s735_s12] ss:$0 sm:$0xff] }
 0x20c   :  { %v485_v36 = vpop.f32.mrf.mxu0  ;;  %v497_v37 = vpop.f32.mrf.mxu1  ;;  %v460_v34 = vld [vmem:[%s736_s13] ss:$0 sm:$0xff] }
 0x20d   :  { %v284_v38 = vmul.f32 %v283_v35, %v276_v29  ;;  %v205_v57 = vmul.f32 %v204_v56, %v197_v54 }
 0x20f   :  { %v285_v39 = vadd.f32 %v284_v38, %v276_v29  ;;  %v206_v58 = vadd.f32 %v205_v57, %v197_v54 }
 0x211   :  { %v286_v40 = vmul.f32 0.7978846, %v285_v39  ;;  %v207_v61 = vmul.f32 0.7978846, %v206_v58 }
 0x213   :  { %521 = vtanh.f32 %v286_v40 }
 0x220   :  { %v522_v41 = vpop.eup %521 }
 0x221   :  { %v288_v43 = vadd.f32 1.0, %v522_v41 }
 0x223   :  { %v289_v44 = vmul.f32 %v288_v43, %v281_v42 }
 0x225   :  { %v291_v45 = vsel %vm290_vm3, %v289_v44, 0.0 }
 0x226   :  { %292 = vadd.xlane.f32.xlu1 %v291_v45 }
 0x2af   :  { %v293_v46 = vpop.xlane.xlu1 %292 }
 0x2b0   :  { %v295_v47 = vmul.f32 0.03125, %v293_v46  ;;  %v65_v46 = vld [vmem:[%s724_s1] sm:$0x3] }
 0x2b2   :  { %v296_v48 = vsub.f32 %v289_v44, %v295_v47  ;;  %v428_v47 = vstv %s427_s22 }
 0x2b4   :  { %v297_v49 = vmul.f32 %v296_v48, %v296_v48 }
 0x2b6   :  { %v298_v50 = vsel %vm290_vm3, %v297_v49, 0.0  ;;  %v425_v49 = vstv %s438_s21 }
 0x2b7   :  { %299 = vadd.xlane.f32.xlu1 %v298_v50  ;;  %v429_v50 = vmul.f32 %v428_v47, %v65_v46 }
 0x340   :  { %v300_v59 = vpop.xlane.xlu1 %299 }
 0x341   :  { %v301_v60 = vmul.f32 0.03125, %v300_v59 }
 0x343   :  { %v302_v62 = vadd.f32 1e-05, %v301_v60 }
 0x345   :  { %523 = vrsqrt.f32 %v302_v62 }
 0x346   :  { %525 = vtanh.f32 %v207_v61 }
 0x352   :  { %v524_v63 = vpop.eup %523 }
 0x353   :  { %v304_v1 = vmul.f32 %v524_v63, %v296_v48  ;;  %v526_v2 = vpop.eup %525 }
 0x354   :  { %v209_v6 = vadd.f32 1.0, %v526_v2 }
 0x355   :  { %v311_v4 = vmul.f32 %v453_v0, %v304_v1 }
 0x356   :  { %v210_v11 = vmul.f32 %v209_v6, %v202_v9 }
 0x357   :  { %v318_v7 = vadd.f32 %v454_v3, %v311_v4 }
 0x359   :  { %v320_v10 = vmul.f32 %v319_v5, %v318_v7 }
 0x35b   :  { %v322_v12 = vadd.f32 %v321_v8, %v320_v10 }
 0x35d   :  { %v323_v13 = vmul.f32 %v322_v12, %v210_v11 }
 0x35f   :  { %v324_v14 = vpack.c.bf16 %v323_v13, %v323_v13 }
 0x361   :  { %503 = vmatmul.mubr.msk.bf16.vlgmr.msra.gmra.mxu0 %vm343_vm4, %v324_v14 }
 0x421   :  { %v381_v16 = vpop.f32.mrf.mxu0 }
 0x422   :  { %v382_v17 = vadd.f32 %v455_v15, %v381_v16 }
 0x423   :  { %v504_v18 = vpop.f32.mrf.mxu0 }
 0x424   :  { %v387_v19 = vsel %vm98_vm0, %v382_v17, 0.0 }
 0x425   :  { %388 = vadd.xlane.f32.xlu0 %v387_v19  ;;  %v384_v20 = vpop.f32.mrf.mxu0 }
 0x427   :  { %v505_v21 = vpop.f32.mrf.mxu0 }
 0x4ae   :  { %v389_v22 = vpop.xlane.xlu0 %388 }
 0x4af   :  { %v390_v23 = vmul.f32 0.015625, %v389_v22 }
 0x4b1   :  { %v391_v25 = vsub.f32 %v382_v17, %v390_v23 }
 0x4b3   :  { %v392_v26 = vmul.f32 %v391_v25, %v391_v25 }
 0x4b5   :  { %v393_v27 = vsel %vm98_vm0, %v392_v26, 0.0 }
 0x4b6   :  { %394 = vadd.xlane.f32.xlu1 %v393_v27 }
 0x53f   :  { %v395_v28 = vpop.xlane.xlu1 %394 }
 0x540   :  { %v396_v29 = vmul.f32 0.015625, %v395_v28 }
 0x542   :  { %v397_v30 = vadd.f32 1e-05, %v396_v29 }
 0x544   :  { %527 = vrsqrt.f32 %v397_v30 }
 0x551   :  { %v528_v31 = vpop.eup %527 }
 0x552   :  { %v399_v33 = vmul.f32 %v528_v31, %v391_v25 }
 0x554   :  { %v406_v35 = vmul.f32 %v459_v32, %v399_v33 }
 0x556   :  { %v413_v36 = vadd.f32 %v460_v34, %v406_v35 }
 0x558   :  { %v415_v37 = vmul.f32 0.044715, %v413_v36  ;;  %v414_v43 = vmul.f32 0.5, %v413_v36 }
 0x55a   :  { %v416_v38 = vmul.f32 %v415_v37, %v413_v36 }
 0x55c   :  { %v417_v39 = vmul.f32 %v416_v38, %v413_v36 }
 0x55e   :  { %v418_v40 = vadd.f32 %v417_v39, %v413_v36 }
 0x560   :  { %v419_v41 = vmul.f32 0.7978846, %v418_v40 }
 0x562   :  { %529 = vtanh.f32 %v419_v41 }
 0x56f   :  { %v530_v42 = vpop.eup %529 }
 0x570   :  { %v421_v44 = vadd.f32 1.0, %v530_v42 }
 0x572   :  { %v422_v45 = vmul.f32 %v421_v44, %v414_v43 }
 0x574   :  { %v423_v48 = vadd.f32 %v422_v45, %v679_v24 }
 0x576   :  { %v424_v51 = vmul.f32 0.5, %v423_v48 }
 0x578   :  { %v426_v52 = vmul.f32 %v425_v49, %v424_v51 }
 0x57a   :  { %v430_v53 = vadd.f32 %v429_v50, %v426_v52 }
 0x57c   :  { %431 = vst.msk [vmem:[%s738_s15] sm:$0x3] %vm98_vm0, %v430_v53 }
 0x57d   :  { %436 = vsyncpa [#allocation3], 1 }

// kernel: mixed_model_forward.7
= control target key start
LH: loop header
LB: loop body
LE: loop exit
PB: predicated region body
PF: predicated region fallthrough
CT: control target
= control target key end

     0   :  { %s907_s0 = inlined_call_operand.vmem [shape: f32[2,64], index: 0, kind: input, shape index: {}]   ;;  %s908_s1 = inlined_call_operand.vmem [shape: f32[2,64], index: 1, kind: input, shape index: {}]   ;;  %s909_s2 = inlined_call_operand.vmem [shape: f32[1,64], index: 2, kind: input, shape index: {}]   ;;  %s910_s3 = inlined_call_operand.vmem [shape: f32[1,64], index: 3, kind: input, shape index: {}]   ;;  %s911_s4 = inlined_call_operand.vmem [shape: bf16[64,32], index: 4, kind: input, shape index: {}]   ;;  %s912_s5 = inlined_call_operand.vmem [shape: f32[1,32], index: 5, kind: input, shape index: {}]   ;;  %s913_s6 = inlined_call_operand.vmem [shape: bf16[64,32], index: 6, kind: input, shape index: {}]   ;;  %s914_s7 = inlined_call_operand.vmem [shape: f32[1,32], index: 7, kind: input, shape index: {}]   ;;  %s915_s8 = inlined_call_operand.vmem [shape: f32[1,32], index: 8, kind: input, shape index: {}]   ;;  %s916_s9 = inlined_call_operand.vmem [shape: f32[1,32], index: 9, kind: input, shape index: {}]   ;;  %s917_s10 = inlined_call_operand.vmem [shape: bf16[32,64], index: 10, kind: input, shape index: {}]   ;;  %s918_s11 = inlined_call_operand.vmem [shape: f32[1,64], index: 11, kind: input, shape index: {}]   ;;  %s919_s12 = inlined_call_operand.vmem [shape: f32[1,64], index: 12, kind: input, shape index: {}]   ;;  %s920_s13 = inlined_call_operand.vmem [shape: f32[1,64], index: 13, kind: input, shape index: {}]   ;;  %s921_s14 = inlined_call_operand.vmem [shape: f32[3], index: 14, kind: input, shape index: {}]   ;;  %s922_s15 = inlined_call_operand.vmem [shape: bf16[64,128], index: 15, kind: input, shape index: {}]   ;;  %s923_s16 = inlined_call_operand.vmem [shape: f32[1,128], index: 16, kind: input, shape index: {}]   ;;  %s924_s17 = inlined_call_operand.hbm [shape: f32[2,128], index: 17, kind: output, shape index: {}]  }
   0x1   :  { %925 = sst [smem:[#allocation8_spill]] %s907_s0 }
   0x2   :  { %926 = sst [smem:[#allocation9_spill]] %s908_s1 }
   0x3   :  { %22 = vsyncpa [#allocation4], 0 }
   0x4   :  { %23 = vsyncpa [#allocation3], 0  ;;  %s58_s26 = sshll.u32 %s921_s14, 4  ;;  %s59_s26 = int_to_ptr.vmem [resolvable:$true] %s58_s26 }
   0x5   :  { %s659_s27 = scalar_lea.vmem %s59_s26, 16  ;;  %p664_p1 = scmp.lt.s32.totalorder %s59_s26, %s59_s26 }
   0x6   :  { %p660_p0 = scmp.ne.s32.totalorder %s59_s26, %s659_s27  ;;  %p665_p2 = scmp.lt.s32.totalorder %s659_s27, %s659_s27 }
   0x8   :  { %p666_p3 = por %p665_p2, %p664_p1 }
   0xa   :  { %p667_p4 = pnand %p666_p3, %p660_p0 }
   0xc   :  { %670 = shalt.err (!%p667_p4)
}
   0xd   :  { %s695_s28 = smov [#allocation2]  }
   0xe   :  { %61 = dma.vmem_to_smem %s59_s26, 16, %s695_s28, [#allocation4]  }
   0xf   :  { %691 = dma.done.wait [#allocation4], 16  }
  0x10   :  { %692 = vsyncadd [#allocation4], 4294967280 }
  0x11   :  { %69 = sfence }
  0x12   :  { %s927_s30 = sld [smem:[#allocation8_spill]]  ;;  %vm105_vm0 = vcmask 517120   ;;  %v633_v7 = vld [vmem:[%s911_s4 + $0x18] sm:$0xff]   ;;  %v696_v9 = vmov 0.0   ;;  %v635_v10 = vld [vmem:[%s911_s4 + $0x10] sm:$0xff]   ;;  %vm697_vm1 = vmmov 0  }
  0x13   :  { %v634_v8 = vld [vmem:[%s913_s6 + $0x18] sm:$0xff]   ;;  %585 = vmatprep.subr.bf16.mxu0 %v696_v9  ;;  %597 = vmatprep.subr.bf16.mxu1 %v696_v9  ;;  %v636_v11 = vld [vmem:[%s913_s6 + $0x10] sm:$0xff]   ;;  %v637_v12 = vld [vmem:[%s911_s4 + $0x8] sm:$0xff]   ;;  %vm165_vm2 = vcmask 523264   ;;  %vm297_vm3 = vcmask 254976   ;;  %s102_s23 = sld [smem:[#allocation2]] }
  0x14   :  { %586 = vmatpush3.bf16.msra.mxu0 %v633_v7  ;;  %598 = vmatpush3.bf16.msra.mxu1 %v634_v8  ;;  %v638_v13 = vld [vmem:[%s913_s6 + $0x8] sm:$0xff]   ;;  %v639_v14 = vld [vmem:[%s911_s4] sm:$0xff]   ;;  %vm350_vm4 = vcmask 261120   ;;  %s928_s1 = sld [smem:[#allocation9_spill]]  ;;  %s698_s21 = smov [#allocation5]  }
  0x15   :  { %587 = vmatprep.subr.bf16.mxu0 %v696_v9  ;;  %599 = vmatprep.subr.bf16.mxu1 %v696_v9  ;;  %v640_v15 = vld [vmem:[%s913_s6] sm:$0xff]   ;;  %v641_v51 = vld [vmem:[%s917_s10 + $0x8] sm:$0xff]   ;;  %s528_s22 = sshll.u32 %s698_s21, 4  ;;  %s529_s22 = int_to_ptr.vmem [resolvable:$true] %s528_s22 }
  0x16   :  { %593 = vmatprep.mubr.msk.bf16.mxu0 %vm697_vm1, %v696_v9  ;;  %605 = vmatprep.mubr.msk.bf16.mxu1 %vm697_vm1, %v696_v9  ;;  %v539_v20 = vld [vmem:[%s909_s2] ss:$0 sm:$0xff]  ;;  %p676_p6 = scmp.lt.s32.totalorder %s529_s22, %s529_s22 }
  0x17   :  { %v540_v22 = vld [vmem:[%s910_s3] ss:$0 sm:$0xff] }
  0x18   :  { %v71_v0 = vld [vmem:[%s927_s30] sm:$0x3]  ;;  %588 = vmatpush3.bf16.msra.mxu0 %v635_v10  ;;  %600 = vmatpush3.bf16.msra.mxu1 %v636_v11 }
  0x19   :  { %v106_v1 = vsel %vm105_vm0, %v71_v0, 0.0  ;;  %589 = vmatprep.subr.bf16.mxu0 %v696_v9  ;;  %601 = vmatprep.subr.bf16.mxu1 %v696_v9  ;;  %v547_v26 = vld [vmem:[%s914_s7] ss:$0 sm:$0xff] }
  0x1a   :  { %107 = vadd.xlane.f32.xlu0 %v106_v1  ;;  %v642_v52 = vld [vmem:[%s917_s10] sm:$0xff]   ;;  %s537_s10 = sld [smem:[#allocation2 + $0x1]] }
  0x1b   :  { %v541_v53 = vld [vmem:[%s912_s5] ss:$0 sm:$0xff] }
  0x1c   :  { %590 = vmatpush3.bf16.msra.mxu0 %v637_v12  ;;  %602 = vmatpush3.bf16.msra.mxu1 %v638_v13 }
  0x1d   :  { %591 = vmatprep.subr.bf16.mxu0 %v696_v9  ;;  %603 = vmatprep.subr.bf16.mxu1 %v696_v9 }
  0x20   :  { %592 = vmatpush3.bf16.msra.mxu0 %v639_v14  ;;  %604 = vmatpush3.bf16.msra.mxu1 %v640_v15  ;;  %v328_v8 = vstv %s537_s10 }
  0x21   :  { %609 = vmatprep.subr.bf16.mxu0 %v696_v9  ;;  %617 = vmatprep.subr.bf16.mxu1 %v696_v9 }
  0xa3   :  { %v108_v2 = vpop.xlane.xlu0 %107 }
  0xa4   :  { %v110_v3 = vmul.f32 0.015625, %v108_v2 }
  0xa6   :  { %v111_v4 = vsub.f32 %v71_v0, %v110_v3  ;;  %v553_v0 = vld [vmem:[%s915_s8] ss:$0 sm:$0xff] }
  0xa7   :  { %v554_v3 = vld [vmem:[%s916_s9] ss:$0 sm:$0xff] }
  0xa8   :  { %v112_v5 = vmul.f32 %v111_v4, %v111_v4 }
  0xaa   :  { %v113_v6 = vsel %vm105_vm0, %v112_v5, 0.0  ;;  %v326_v5 = vstv %s102_s23  ;;  %s671_s23 = scalar_lea.vmem %s529_s22, 32 }
  0xab   :  { %114 = vadd.xlane.f32.xlu0 %v113_v6  ;;  %p672_p5 = scmp.ne.s32.totalorder %s529_s22, %s671_s23  ;;  %p677_p7 = scmp.lt.s32.totalorder %s671_s23, %s671_s23 }
  0xad   :  { %p678_p8 = por %p677_p7, %p676_p6 }
  0xaf   :  { %p679_p9 = pnand %p678_p8, %p672_p5 }
 0x134   :  { %v115_v16 = vpop.xlane.xlu0 %114 }
 0x135   :  { %v116_v17 = vmul.f32 0.015625, %v115_v16  ;;  %v555_v16 = vld [vmem:[%s918_s11] ss:$0 sm:$0xff] }
 0x137   :  { %v117_v18 = vadd.f32 1e-05, %v116_v17 }
 0x139   :  { %647 = vrsqrt.f32 %v117_v18 }
 0x146   :  { %v648_v19 = vpop.eup %647 }
 0x147   :  { %v119_v21 = vmul.f32 %v648_v19, %v111_v4 }
 0x149   :  { %v126_v23 = vmul.f32 %v539_v20, %v119_v21 }
 0x14b   :  { %v841_v24 = vadd.f32 %v540_v22, %v126_v23 }
 0x14d   :  { %v134_v25 = vpack.c.bf16 %v841_v24, %v841_v24 }
 0x14f   :  { %594 = vmatmul.mubr.msk.bf16.vlgmr.msra.gmra.mxu0 %vm165_vm2, %v134_v25  ;;  %606 = vmatmul.mubr.msk.bf16.vlgmr.msra.gmra.mxu1 %vm165_vm2, %v134_v25 }
 0x150   :  { %613 = vmatprep.mubr.msk.bf16.mxu0 %vm697_vm1, %v696_v9  ;;  %625 = vmatprep.mubr.msk.bf16.mxu1 %vm697_vm1, %v696_v9 }
 0x151   :  { %610 = vmatpush3.bf16.msra.mxu0 %v641_v51 }
 0x152   :  { %611 = vmatprep.subr.bf16.mxu0 %v696_v9 }
 0x155   :  { %612 = vmatpush3.bf16.msra.mxu0 %v642_v52 }
 0x20f   :  { %v203_v27 = vpop.f32.mrf.mxu0  ;;  %v282_v28 = vpop.f32.mrf.mxu1 }
 0x210   :  { %v283_v29 = vadd.f32 %v547_v26, %v282_v28  ;;  %v204_v54 = vadd.f32 %v541_v53, %v203_v27 }
 0x211   :  { %v595_v30 = vpop.f32.mrf.mxu0  ;;  %v607_v31 = vpop.f32.mrf.mxu1 }
 0x212   :  { %v289_v32 = vmul.f32 0.044715, %v283_v29  ;;  %v288_v42 = vmul.f32 0.5, %v283_v29  ;;  %v210_v55 = vmul.f32 0.044715, %v204_v54  ;;  %v209_v10 = vmul.f32 0.5, %v204_v54 }
 0x213   :  { %v206_v33 = vpop.f32.mrf.mxu0  ;;  %v285_v34 = vpop.f32.mrf.mxu1  ;;  %v644_v30 = vld [vmem:[%s922_s15 + $0x10] sm:$0xff]   ;;  %v645_v31 = vld [vmem:[%s922_s15 + $0x8] sm:$0xff]  }
 0x214   :  { %v290_v35 = vmul.f32 %v289_v32, %v283_v29  ;;  %v211_v56 = vmul.f32 %v210_v55, %v204_v54  ;;  %v646_v32 = vld [vmem:[%s922_s15] sm:$0xff]  }
 0x215   :  { %v596_v36 = vpop.f32.mrf.mxu0  ;;  %v608_v37 = vpop.f32.mrf.mxu1 }
 0x216   :  { %v291_v38 = vmul.f32 %v290_v35, %v283_v29  ;;  %v212_v57 = vmul.f32 %v211_v56, %v204_v54  ;;  %v559_v37 = vld [vmem:[%s919_s12] ss:$0 sm:$0xff] }
 0x218   :  { %v292_v39 = vadd.f32 %v291_v38, %v283_v29  ;;  %v213_v58 = vadd.f32 %v212_v57, %v204_v54  ;;  %v643_v29 = vld [vmem:[%s922_s15 + $0x18] sm:$0xff]   ;;  %s538_s15 = sld [smem:[#allocation2 + $0x2]] }
 0x219   :  { %618 = vmatpush3.bf16.msra.mxu1 %v643_v29 }
 0x21a   :  { %v293_v40 = vmul.f32 0.7978846, %v292_v39  ;;  %v214_v61 = vmul.f32 0.7978846, %v213_v58  ;;  %619 = vmatprep.subr.bf16.mxu1 %v696_v9  ;;  %v560_v39 = vld [vmem:[%s920_s13] ss:$0 sm:$0xff] }
 0x21c   :  { %649 = vtanh.f32 %v293_v40 }
 0x21d   :  { %620 = vmatpush3.bf16.msra.mxu1 %v644_v30 }
 0x21e   :  { %621 = vmatprep.subr.bf16.mxu1 %v696_v9  ;;  %s434_s3 = ssub.f32 1.0, %s538_s15  ;;  %v432_v53 = vstv %s538_s15 }
 0x220   :  { %v435_v51 = vstv %s434_s3 }
 0x221   :  { %622 = vmatpush3.bf16.msra.mxu1 %v645_v31 }
 0x222   :  { %623 = vmatprep.subr.bf16.mxu1 %v696_v9 }
 0x225   :  { %624 = vmatpush3.bf16.msra.mxu1 %v646_v32 }
 0x229   :  { %v650_v41 = vpop.eup %649 }
 0x22a   :  { %v295_v43 = vadd.f32 1.0, %v650_v41 }
 0x22c   :  { %v296_v44 = vmul.f32 %v295_v43, %v288_v42 }
 0x22e   :  { %v298_v45 = vsel %vm297_vm3, %v296_v44, 0.0 }
 0x22f   :  { %299 = vadd.xlane.f32.xlu1 %v298_v45 }
 0x2b8   :  { %v300_v46 = vpop.xlane.xlu1 %299 }
 0x2b9   :  { %v302_v47 = vmul.f32 0.03125, %v300_v46 }
 0x2bb   :  { %v303_v48 = vsub.f32 %v296_v44, %v302_v47 }
 0x2bd   :  { %v304_v49 = vmul.f32 %v303_v48, %v303_v48 }
 0x2bf   :  { %v305_v50 = vsel %vm297_vm3, %v304_v49, 0.0 }
 0x2c0   :  { %306 = vadd.xlane.f32.xlu1 %v305_v50  ;;  %v72_v50 = vld [vmem:[%s928_s1] sm:$0x3] }
 0x2c1   :  { %v436_v55 = vmul.f32 %v435_v51, %v72_v50 }
 0x349   :  { %v307_v59 = vpop.xlane.xlu1 %306 }
 0x34a   :  { %v308_v60 = vmul.f32 0.03125, %v307_v59  ;;  %v561_v59 = vld [vmem:[%s923_s16] ss:$0 sm:$0xff] }
 0x34c   :  { %v309_v62 = vadd.f32 1e-05, %v308_v60 }
 0x34e   :  { %651 = vrsqrt.f32 %v309_v62 }
 0x34f   :  { %653 = vtanh.f32 %v214_v61 }
 0x35b   :  { %v652_v63 = vpop.eup %651 }
 0x35c   :  { %v311_v1 = vmul.f32 %v652_v63, %v303_v48  ;;  %v654_v2 = vpop.eup %653 }
 0x35d   :  { %v216_v6 = vadd.f32 1.0, %v654_v2 }
 0x35e   :  { %v318_v4 = vmul.f32 %v553_v0, %v311_v1 }
 0x35f   :  { %v217_v12 = vmul.f32 %v216_v6, %v209_v10 }
 0x360   :  { %v325_v7 = vadd.f32 %v554_v3, %v318_v4 }
 0x362   :  { %v327_v11 = vmul.f32 %v326_v5, %v325_v7 }
 0x364   :  { %v329_v13 = vadd.f32 %v328_v8, %v327_v11 }
 0x366   :  { %v330_v14 = vmul.f32 %v329_v13, %v217_v12 }
 0x368   :  { %v331_v15 = vpack.c.bf16 %v330_v14, %v330_v14 }
 0x36a   :  { %614 = vmatmul.mubr.msk.bf16.vlgmr.msra.gmra.mxu0 %vm350_vm4, %v331_v15 }
 0x42a   :  { %v388_v17 = vpop.f32.mrf.mxu0 }
 0x42b   :  { %v389_v18 = vadd.f32 %v555_v16, %v388_v17 }
 0x42c   :  { %v615_v19 = vpop.f32.mrf.mxu0 }
 0x42d   :  { %v394_v20 = vsel %vm105_vm0, %v389_v18, 0.0 }
 0x42e   :  { %395 = vadd.xlane.f32.xlu0 %v394_v20  ;;  %v391_v21 = vpop.f32.mrf.mxu0 }
 0x430   :  { %v616_v22 = vpop.f32.mrf.mxu0 }
 0x4b7   :  { %v396_v23 = vpop.xlane.xlu0 %395 }
 0x4b8   :  { %v397_v25 = vmul.f32 0.015625, %v396_v23 }
 0x4ba   :  { %v398_v26 = vsub.f32 %v389_v18, %v397_v25 }
 0x4bc   :  { %v399_v27 = vmul.f32 %v398_v26, %v398_v26 }
 0x4be   :  { %v400_v28 = vsel %vm105_vm0, %v399_v27, 0.0 }
 0x4bf   :  { %401 = vadd.xlane.f32.xlu1 %v400_v28 }
 0x548   :  { %v402_v33 = vpop.xlane.xlu1 %401 }
 0x549   :  { %v403_v34 = vmul.f32 0.015625, %v402_v33 }
 0x54b   :  { %v404_v35 = vadd.f32 1e-05, %v403_v34 }
 0x54d   :  { %655 = vrsqrt.f32 %v404_v35 }
 0x55a   :  { %v656_v36 = vpop.eup %655 }
 0x55b   :  { %v406_v38 = vmul.f32 %v656_v36, %v398_v26 }
 0x55d   :  { %v413_v40 = vmul.f32 %v559_v37, %v406_v38 }
 0x55f   :  { %v420_v41 = vadd.f32 %v560_v39, %v413_v40 }
 0x561   :  { %v422_v42 = vmul.f32 0.044715, %v420_v41  ;;  %v421_v47 = vmul.f32 0.5, %v420_v41 }
 0x563   :  { %v423_v43 = vmul.f32 %v422_v42, %v420_v41 }
 0x565   :  { %v424_v9 = vmul.f32 %v423_v43, %v420_v41 }
 0x567   :  { %v425_v44 = vadd.f32 %v424_v9, %v420_v41 }
 0x569   :  { %v426_v45 = vmul.f32 0.7978846, %v425_v44 }
 0x56b   :  { %657 = vtanh.f32 %v426_v45 }
 0x578   :  { %v658_v46 = vpop.eup %657 }
 0x579   :  { %v428_v48 = vadd.f32 1.0, %v658_v46 }
 0x57b   :  { %v429_v49 = vmul.f32 %v428_v48, %v421_v47 }
 0x57d   :  { %v430_v52 = vadd.f32 %v429_v49, %v841_v24 }
 0x57f   :  { %v431_v54 = vmul.f32 0.5, %v430_v52 }
 0x581   :  { %v433_v56 = vmul.f32 %v432_v53, %v431_v54 }
 0x583   :  { %v437_v57 = vadd.f32 %v436_v55, %v433_v56 }
 0x585   :  { %v438_v58 = vpack.c.bf16 %v437_v57, %v437_v57 }
 0x587   :  { %626 = vmatmul.mubr.msk.bf16.vlgmr.msra.gmra.mxu1 %vm165_vm2, %v438_v58 }
 0x647   :  { %v515_v60 = vpop.f32.mrf.mxu1 }
 0x648   :  { %v516_v61 = vadd.f32 %v561_v59, %v515_v60 }
 0x649   :  { %v627_v62 = vpop.f32.mrf.mxu1 }
 0x64a   :  { %521 = vst [vmem:[#allocation5] sm:$0x3] %v516_v61 }
 0x64b   :  { %v518_v24 = vpop.f32.mrf.mxu1 }
 0x64c   :  { %682 = shalt.err (!%p679_p9)
}
 0x64d   :  { %531 = dma.vmem_to_hbm [thread:$0]  %s529_s22, 32, %s924_s17, [#allocation3]   ;;  %v628_v63 = vpop.f32.mrf.mxu1 }
 0x64e   :  { %693 = dma.done.wait [#allocation3], 32  }
 0x64f   :  { %694 = vsyncadd [#allocation3], 4294967264 }
 0x650   :  { %535 = vsyncpa [#allocation3], 1 }
 0x651   :  { %536 = vsyncpa [#allocation4], 1 }

</bundles_post_ra>
